<compile_context>
chip_gen: v6e
topology: v6e:2x2x1
jax: 0.10.0
libtpu: 0.0.40
codegen_flags: <defaults>
</compile_context>

<pallas_src>
import functools
import math

import jax
import jax.numpy as jnp
from jax.experimental import pallas as pl
from jax.experimental.pallas import tpu as pltpu

# ----- model config (mirrors the PyTorch args) ------------------------------
TRX_TYPE_VOCAB = 26 + 1
TRX_DAY_VOCAB = 31 + 1
TYPE_DIM = 8          # args.trx_type_embedding_dim
AMT_DIM = 4           # args.trx_amt_embedding_dim
DAY_DIM = 4           # args.trx_day_embedding_dim
HIDDEN = 32           # args.transformer_hidden_dim
NHEAD = 2             # args.transformer_nhead
NLAYERS = 2           # args.transformer_nlayers
FFN = HIDDEN * 4

NEG_INF = -1e30

# ----- packed-slab layout constants ------------------------------------------
TYPE_PAD = 32                              # day one-hot column offset
EMB_ROWS = 64                              # rows 0..31 type table, 32..63 day table
L_ROWS = HIDDEN + HIDDEN + HIDDEN + FFN    # wqkv(32) + wo(32) + w1(32) + w2(128)
WSLAB_ROWS = EMB_ROWS + NLAYERS * L_ROWS   # 512
SLAB_COLS = 128
VSLAB_ROWS = 24                            # 2 + NLAYERS*8 = 18, padded to 24


def _full_spec(shape):
    # Full-array block (satisfies the (8,128) rule by "equal full array dims").
    n = len(shape)
    return pl.BlockSpec(shape, lambda i, n=n: (0,) * n)


# ---------------------------------------------------------------------------
# Single fused kernel: embeddings + merge + NLAYERS encoder layers
# ---------------------------------------------------------------------------
def _fused_forward_kernel(data_ref, w_ref, v_ref, out_ref, *, nhead, nlayers, bs):
    BS = bs
    H = HIDDEN
    dh = H // nhead
    scale = 1.0 / math.sqrt(dh)

    def layer_norm(x, g, b, eps=1e-5):
        mu = jnp.mean(x, axis=-1, keepdims=True)
        var = jnp.mean((x - mu) * (x - mu), axis=-1, keepdims=True)
        return (x - mu) * jax.lax.rsqrt(var + eps) * g + b

    # ---- unpack the per-call data slab (single DMA) -------------------------
    bias = data_ref[:, 0:BS]                                # (BS, BS) f32, 0 / -inf
    type_id = data_ref[:, BS:BS + 1].astype(jnp.int32)      # (BS, 1)
    amt = data_ref[:, BS + 1:BS + 2]                        # (BS, 1) f32
    day_id = data_ref[:, BS + 2:BS + 3].astype(jnp.int32)   # (BS, 1)

    # ---- fused embedding: one (BS,64) one-hot against one folded table ------
    iota = jax.lax.broadcasted_iota(jnp.int32, (BS, EMB_ROWS), 1)
    hot = (iota == type_id) | (iota == (day_id + TYPE_PAD))
    oh = jnp.where(hot, 1.0, 0.0).astype(jnp.bfloat16)      # (BS, 64) bf16

    emb_tab = w_ref[0:EMB_ROWS, 0:H]                        # (64, H) bf16
    v_amt = v_ref[0:1, 0:H]                                 # (1, H) f32
    c_merge = v_ref[1:2, 0:H]                               # (1, H) f32

    x = (jnp.dot(oh, emb_tab, preferred_element_type=jnp.float32)
         + amt * v_amt + c_merge)                           # (BS, H) f32

    # ---- encoder layers (static unroll, residual stays resident) -----------
    for l in range(nlayers):
        wb = EMB_ROWS + l * L_ROWS
        vb = 2 + l * 8

        wqkv = w_ref[wb:wb + H, 0:3 * H]                    # (H, 3H) bf16
        wo = w_ref[wb + H:wb + 2 * H, 0:H]                  # (H, H)  bf16
        w1 = w_ref[wb + 2 * H:wb + 3 * H, 0:FFN]            # (H, FFN) bf16
        w2 = w_ref[wb + 3 * H:wb + 3 * H + FFN, 0:H]        # (FFN, H) bf16

        bqkv = v_ref[vb + 0:vb + 1, 0:3 * H]                # (1, 3H) f32
        bo = v_ref[vb + 1:vb + 2, 0:H]
        ln1g = v_ref[vb + 2:vb + 3, 0:H]
        ln1b = v_ref[vb + 3:vb + 4, 0:H]
        b1 = v_ref[vb + 4:vb + 5, 0:FFN]
        b2 = v_ref[vb + 5:vb + 6, 0:H]
        ln2g = v_ref[vb + 6:vb + 7, 0:H]
        ln2b = v_ref[vb + 7:vb + 8, 0:H]

        # fused QKV projection: (BS, H) @ (H, 3H)
        qkv = (jnp.dot(x.astype(jnp.bfloat16), wqkv,
                       preferred_element_type=jnp.float32) + bqkv)
        qkv_b = qkv.astype(jnp.bfloat16)                    # (BS, 3H)

        attn = bo                                           # (1, H) f32
        for h in range(nhead):                              # static head loop
            qh = qkv_b[:, h * dh:(h + 1) * dh]              # (BS, dh)
            kh = qkv_b[:, H + h * dh:H + (h + 1) * dh]      # (BS, dh)
            vh = qkv_b[:, 2 * H + h * dh:2 * H + (h + 1) * dh]

            # flattened scores: (BS, dh) x (BS, dh)^T -> (BS, BS)
            s = jax.lax.dot_general(qh, kh, (((1,), (1,)), ((), ())),
                                    preferred_element_type=jnp.float32)
            s = s * scale + bias
            smax = jnp.max(s, axis=-1, keepdims=True)
            e = jnp.exp(s - smax)
            denom = jnp.sum(e, axis=-1, keepdims=True)
            p = e * pl.reciprocal(denom, approx=True)       # softmax in f32

            ctx = jnp.dot(p.astype(jnp.bfloat16), vh,
                          preferred_element_type=jnp.float32)   # (BS, dh)
            # concat(ctx_h) @ Wo == sum_h ctx_h @ Wo[h*dh:(h+1)*dh, :]
            attn = attn + jnp.dot(ctx.astype(jnp.bfloat16),
                                  wo[h * dh:(h + 1) * dh, :],
                                  preferred_element_type=jnp.float32)

        # dropout(0.2) -> identity at inference
        x = layer_norm(x + attn, ln1g, ln1b)

        f = jnp.maximum(jnp.dot(x.astype(jnp.bfloat16), w1,
                                preferred_element_type=jnp.float32) + b1, 0.0)
        f = jnp.dot(f.astype(jnp.bfloat16), w2,
                    preferred_element_type=jnp.float32) + b2
        x = layer_norm(x + f, ln2g, ln2b)

    out_ref[...] = x                                        # (BS, H) f32


# ---------------------------------------------------------------------------
# Parameter init (deterministic, synthetic) — same layout as the PyTorch model
# ---------------------------------------------------------------------------
def _xavier(key, fan_in, fan_out, shape):
    std = math.sqrt(2.0 / (fan_in + fan_out))
    return jax.random.normal(key, shape, jnp.float32) * std


def init_params(key):
    ks = jax.random.split(key, 8 + NLAYERS)
    din = TYPE_DIM + AMT_DIM + DAY_DIM

    type_tab = jax.random.normal(ks[0], (TRX_TYPE_VOCAB, TYPE_DIM), jnp.float32)
    type_tab = type_tab.at[0].set(0.0)          # padding_idx=0
    day_tab = jax.random.normal(ks[1], (TRX_DAY_VOCAB, DAY_DIM), jnp.float32)
    day_tab = day_tab.at[0].set(0.0)            # padding_idx=0

    params = {
        'type_table': type_tab,
        'day_table': day_tab,
        'w_amt': _xavier(ks[2], 1, AMT_DIM, (1, AMT_DIM)),     # Linear(1, Da)
        'b_amt': jnp.zeros((1, AMT_DIM), jnp.float32),
        # fc_merge weight split into the three concat slices (pre-transposed).
        'wm_t': _xavier(ks[3], din, HIDDEN, (TYPE_DIM, HIDDEN)),
        'wm_a': _xavier(ks[4], din, HIDDEN, (AMT_DIM, HIDDEN)),
        'wm_d': _xavier(ks[5], din, HIDDEN, (DAY_DIM, HIDDEN)),
        'b_merge': jnp.zeros((1, HIDDEN), jnp.float32),
        'layers': [],
    }
    for l in range(NLAYERS):
        lk = jax.random.split(ks[8 + l], 6)
        params['layers'].append({
            'wq': _xavier(lk[0], HIDDEN, HIDDEN, (HIDDEN, HIDDEN)),
            'bq': jnp.zeros((1, HIDDEN), jnp.float32),
            'wk': _xavier(lk[1], HIDDEN, HIDDEN, (HIDDEN, HIDDEN)),
            'bk': jnp.zeros((1, HIDDEN), jnp.float32),
            'wv': _xavier(lk[2], HIDDEN, HIDDEN, (HIDDEN, HIDDEN)),
            'bv': jnp.zeros((1, HIDDEN), jnp.float32),
            'wo': _xavier(lk[3], HIDDEN, HIDDEN, (HIDDEN, HIDDEN)),
            'bo': jnp.zeros((1, HIDDEN), jnp.float32),
            'ln1g': jnp.ones((1, HIDDEN), jnp.float32),
            'ln1b': jnp.zeros((1, HIDDEN), jnp.float32),
            'w1': _xavier(lk[4], HIDDEN, FFN, (HIDDEN, FFN)),
            'b1': jnp.zeros((1, FFN), jnp.float32),
            'w2': _xavier(lk[5], FFN, HIDDEN, (FFN, HIDDEN)),
            'b2': jnp.zeros((1, HIDDEN), jnp.float32),
            'ln2g': jnp.ones((1, HIDDEN), jnp.float32),
            'ln2b': jnp.zeros((1, HIDDEN), jnp.float32),
        })
    return params


def prepare_params(p):
    """One-time wrapper-side fc_merge folding + packing into two kernel slabs."""
    H = HIDDEN
    # Fold fc_merge into the embedding tables and the amount projection.
    t_type = p['type_table'] @ p['wm_t']                     # (27, H) f32
    t_day = p['day_table'] @ p['wm_d']                       # (32, H) f32
    v_amt = p['w_amt'] @ p['wm_a']                           # (1, H) f32
    c_merge = p['b_amt'] @ p['wm_a'] + p['b_merge']          # (1, H) f32

    emb = jnp.zeros((EMB_ROWS, H), jnp.float32)
    emb = emb.at[0:TRX_TYPE_VOCAB].set(t_type)               # cols 0..26 of one-hot
    emb = emb.at[TYPE_PAD:TYPE_PAD + TRX_DAY_VOCAB].set(t_day)  # cols 32..63

    # --- bf16 matmul-weight slab -------------------------------------------
    wslab = jnp.zeros((WSLAB_ROWS, SLAB_COLS), jnp.float32)
    wslab = wslab.at[0:EMB_ROWS, 0:H].set(emb)
    for l, lp in enumerate(p['layers']):
        base = EMB_ROWS + l * L_ROWS
        wqkv = jnp.concatenate([lp['wq'], lp['wk'], lp['wv']], axis=1)
        wslab = wslab.at[base:base + H, 0:3 * H].set(wqkv)
        wslab = wslab.at[base + H:base + 2 * H, 0:H].set(lp['wo'])
        wslab = wslab.at[base + 2 * H:base + 3 * H, 0:FFN].set(lp['w1'])
        wslab = wslab.at[base + 3 * H:base + 3 * H + FFN, 0:H].set(lp['w2'])
    wslab = wslab.astype(jnp.bfloat16)

    # --- f32 vector-param slab (one param per row) ---------------------------
    vslab = jnp.zeros((VSLAB_ROWS, SLAB_COLS), jnp.float32)
    vslab = vslab.at[0, 0:H].set(v_amt[0])
    vslab = vslab.at[1, 0:H].set(c_merge[0])
    for l, lp in enumerate(p['layers']):
        vb = 2 + l * 8
        bqkv = jnp.concatenate([lp['bq'], lp['bk'], lp['bv']], axis=1)
        vslab = vslab.at[vb + 0, 0:3 * H].set(bqkv[0])
        vslab = vslab.at[vb + 1, 0:H].set(lp['bo'][0])
        vslab = vslab.at[vb + 2, 0:H].set(lp['ln1g'][0])
        vslab = vslab.at[vb + 3, 0:H].set(lp['ln1b'][0])
        vslab = vslab.at[vb + 4, 0:FFN].set(lp['b1'][0])
        vslab = vslab.at[vb + 5, 0:H].set(lp['b2'][0])
        vslab = vslab.at[vb + 6, 0:H].set(lp['ln2g'][0])
        vslab = vslab.at[vb + 7, 0:H].set(lp['ln2b'][0])

    return {'wslab': wslab, 'vslab': vslab}


# ---------------------------------------------------------------------------
# Full forward — one pallas_call, 3 inputs
# ---------------------------------------------------------------------------
def transaction_model_forward(x, prepared):
    trx_type, trx_amt, trx_day, mask = (x['trx_type'], x['trx_amt'],
                                        x['trx_day'], x['mask_trx'])
    B, S = trx_type.shape
    BS = B * S

    # Precompute the flattened (BS, BS) additive attention bias:
    # key-padding mask + block-diagonal "same sequence" mask.
    seq_ids = jnp.repeat(jnp.arange(B, dtype=jnp.int32), S)          # (BS,)
    same_seq = seq_ids[:, None] == seq_ids[None, :]                  # (BS, BS)
    key_keep = mask.reshape(BS) > 0
    bias = jnp.where(same_seq & key_keep[None, :], 0.0, NEG_INF)
    bias = bias.astype(jnp.float32)

    # Pack bias + token columns into a single per-call data slab.
    tok = jnp.stack([trx_type.reshape(BS).astype(jnp.float32),
                     trx_amt.reshape(BS).astype(jnp.float32),
                     trx_day.reshape(BS).astype(jnp.float32),
                     jnp.zeros((BS,), jnp.float32)], axis=1)          # (BS, 4)
    data = jnp.concatenate([bias, tok], axis=1)                       # (BS, BS+4)

    wslab, vslab = prepared['wslab'], prepared['vslab']

    out2d = pl.pallas_call(
        functools.partial(_fused_forward_kernel, nhead=NHEAD, nlayers=NLAYERS,
                          bs=BS),
        out_shape=jax.ShapeDtypeStruct((BS, HIDDEN), jnp.float32),
        grid=(1,),
        in_specs=[_full_spec(data.shape),
                  _full_spec(wslab.shape),
                  _full_spec(vslab.shape)],
        out_specs=_full_spec((BS, HIDDEN)),
        compiler_params=pltpu.CompilerParams(
            dimension_semantics=("arbitrary",)),
    )(data, wslab, vslab)

    return out2d.reshape(B, S, HIDDEN)


if __name__ == "__main__":
    B, S = 2, 8
    key = jax.random.PRNGKey(0)
    k1, k2, k3, kp = jax.random.split(key, 4)

    # mask_trx: 1 = valid token, 0 = padding
    mask_trx = jnp.ones((B, S), jnp.float32).at[1, S - 3:].set(0.0)
    trx_type = jax.random.randint(k1, (B, S), 1, TRX_TYPE_VOCAB, jnp.int32)
    trx_day = jax.random.randint(k2, (B, S), 1, TRX_DAY_VOCAB, jnp.int32)
    trx_type = (trx_type * mask_trx.astype(jnp.int32)).astype(jnp.int32)
    trx_day = (trx_day * mask_trx.astype(jnp.int32)).astype(jnp.int32)
    trx_amt = jax.random.normal(k3, (B, S), jnp.float32)

    params = init_params(kp)
    prepared = prepare_params(params)
    x = {'trx_type': trx_type, 'trx_amt': trx_amt, 'trx_day': trx_day,
         'mask_trx': mask_trx}

    out = transaction_model_forward(x, prepared)
    jax.block_until_ready(out)
    assert out.shape == (B, S, HIDDEN) and out.dtype == jnp.float32
    assert bool(jnp.all(jnp.isfinite(out)))
    print("KERNEL_OK")
</pallas_src>

<mosaic_0001>
module attributes {stable_mosaic.version = 11 : i64} {
  func.func @_fused_forward_kernel(%arg0: i32, %arg1: memref<16x20xf32, #tpu.memory_space<vmem>>, %arg2: memref<512x128xbf16, #tpu.memory_space<vmem>>, %arg3: memref<24x128xf32, #tpu.memory_space<vmem>>, %arg4: memref<16x32xf32, #tpu.memory_space<vmem>>) attributes {dimension_semantics = [#tpu.dimension_semantics<arbitrary>], iteration_bounds = array<i64: 1>, scalar_prefetch = 0 : i64, scratch_operands = 0 : i64, tpu.core_type = #tpu.core_type<tc>, window_params = [{pipeline_mode = #tpu.pipeline_mode<synchronous>, transform_indices = @transform_0, window_bounds = array<i64: 16, 20>}, {pipeline_mode = #tpu.pipeline_mode<synchronous>, transform_indices = @transform_1, window_bounds = array<i64: 512, 128>}, {pipeline_mode = #tpu.pipeline_mode<synchronous>, transform_indices = @transform_2, window_bounds = array<i64: 24, 128>}, {pipeline_mode = #tpu.pipeline_mode<synchronous>, transform_indices = @transform_3, window_bounds = array<i64: 16, 32>}]} {
    %c0 = arith.constant 0 : index
    %c0_0 = arith.constant 0 : index
    %0 = vector.load %arg1[%c0, %c0_0] : memref<16x20xf32, #tpu.memory_space<vmem>>, vector<16x16xf32>
    %c0_1 = arith.constant 0 : index
    %c16 = arith.constant 16 : index
    %1 = vector.load %arg1[%c0_1, %c16] : memref<16x20xf32, #tpu.memory_space<vmem>>, vector<16x1xf32>
    %2 = arith.fptosi %1 : vector<16x1xf32> to vector<16x1xi32>
    %c0_2 = arith.constant 0 : index
    %c17 = arith.constant 17 : index
    %3 = vector.load %arg1[%c0_2, %c17] : memref<16x20xf32, #tpu.memory_space<vmem>>, vector<16x1xf32>
    %c0_3 = arith.constant 0 : index
    %c18 = arith.constant 18 : index
    %4 = vector.load %arg1[%c0_3, %c18] : memref<16x20xf32, #tpu.memory_space<vmem>>, vector<16x1xf32>
    %5 = arith.fptosi %4 : vector<16x1xf32> to vector<16x1xi32>
    %6 = tpu.iota {dimensions = array<i32: 1>} : vector<16x64xi32>
    %7 = vector.broadcast %2 : vector<16x1xi32> to vector<16x64xi32>
    %8 = arith.cmpi eq, %6, %7 : vector<16x64xi32>
    %c32_i32 = arith.constant 32 : i32
    %9 = vector.broadcast %c32_i32 : i32 to vector<16x1xi32>
    %10 = arith.addi %5, %9 : vector<16x1xi32>
    %11 = vector.broadcast %10 : vector<16x1xi32> to vector<16x64xi32>
    %12 = arith.cmpi eq, %6, %11 : vector<16x64xi32>
    %13 = arith.ori %8, %12 : vector<16x64xi1>
    %cst = arith.constant 1.000000e+00 : f32
    %cst_4 = arith.constant 0.000000e+00 : f32
    %14 = vector.broadcast %cst : f32 to vector<16x64xf32>
    %15 = vector.broadcast %cst_4 : f32 to vector<16x64xf32>
    %16 = arith.select %13, %14, %15 : vector<16x64xi1>, vector<16x64xf32>
    %17 = arith.truncf %16 : vector<16x64xf32> to vector<16x64xbf16>
    %c0_5 = arith.constant 0 : index
    %c0_6 = arith.constant 0 : index
    %18 = vector.load %arg2[%c0_5, %c0_6] : memref<512x128xbf16, #tpu.memory_space<vmem>>, vector<64x32xbf16>
    %c0_7 = arith.constant 0 : index
    %c0_8 = arith.constant 0 : index
    %19 = vector.load %arg3[%c0_7, %c0_8] : memref<24x128xf32, #tpu.memory_space<vmem>>, vector<1x32xf32>
    %c1 = arith.constant 1 : index
    %c0_9 = arith.constant 0 : index
    %20 = vector.load %arg3[%c1, %c0_9] : memref<24x128xf32, #tpu.memory_space<vmem>>, vector<1x32xf32>
    %cst_10 = arith.constant dense<0.000000e+00> : vector<16x32xf32>
    %21 = tpu.matmul %17, %18, %cst_10 {dimension_numbers = #tpu.dot_dimension_numbers<[1], [0], [0], [1], [0, 0, 1, 1], [], []>} : vector<16x64xbf16>, vector<64x32xbf16>, vector<16x32xf32> -> vector<16x32xf32>
    %22 = vector.broadcast %3 : vector<16x1xf32> to vector<16x32xf32>
    %23 = vector.broadcast %19 : vector<1x32xf32> to vector<16x32xf32>
    %24 = arith.mulf %22, %23 : vector<16x32xf32>
    %25 = arith.addf %21, %24 : vector<16x32xf32>
    %26 = vector.broadcast %20 : vector<1x32xf32> to vector<16x32xf32>
    %27 = arith.addf %25, %26 : vector<16x32xf32>
    %c64 = arith.constant 64 : index
    %c0_11 = arith.constant 0 : index
    %28 = vector.load %arg2[%c64, %c0_11] : memref<512x128xbf16, #tpu.memory_space<vmem>>, vector<32x96xbf16>
    %c96 = arith.constant 96 : index
    %c0_12 = arith.constant 0 : index
    %29 = vector.load %arg2[%c96, %c0_12] : memref<512x128xbf16, #tpu.memory_space<vmem>>, vector<32x32xbf16>
    %c128 = arith.constant 128 : index
    %c0_13 = arith.constant 0 : index
    %30 = vector.load %arg2[%c128, %c0_13] : memref<512x128xbf16, #tpu.memory_space<vmem>>, vector<32x128xbf16>
    %c160 = arith.constant 160 : index
    %c0_14 = arith.constant 0 : index
    %31 = vector.load %arg2[%c160, %c0_14] : memref<512x128xbf16, #tpu.memory_space<vmem>>, vector<128x32xbf16>
    %c2 = arith.constant 2 : index
    %c0_15 = arith.constant 0 : index
    %32 = vector.load %arg3[%c2, %c0_15] : memref<24x128xf32, #tpu.memory_space<vmem>>, vector<1x96xf32>
    %c3 = arith.constant 3 : index
    %c0_16 = arith.constant 0 : index
    %33 = vector.load %arg3[%c3, %c0_16] : memref<24x128xf32, #tpu.memory_space<vmem>>, vector<1x32xf32>
    %c4 = arith.constant 4 : index
    %c0_17 = arith.constant 0 : index
    %34 = vector.load %arg3[%c4, %c0_17] : memref<24x128xf32, #tpu.memory_space<vmem>>, vector<1x32xf32>
    %c5 = arith.constant 5 : index
    %c0_18 = arith.constant 0 : index
    %35 = vector.load %arg3[%c5, %c0_18] : memref<24x128xf32, #tpu.memory_space<vmem>>, vector<1x32xf32>
    %c6 = arith.constant 6 : index
    %c0_19 = arith.constant 0 : index
    %36 = vector.load %arg3[%c6, %c0_19] : memref<24x128xf32, #tpu.memory_space<vmem>>, vector<1x128xf32>
    %c7 = arith.constant 7 : index
    %c0_20 = arith.constant 0 : index
    %37 = vector.load %arg3[%c7, %c0_20] : memref<24x128xf32, #tpu.memory_space<vmem>>, vector<1x32xf32>
    %c8 = arith.constant 8 : index
    %c0_21 = arith.constant 0 : index
    %38 = vector.load %arg3[%c8, %c0_21] : memref<24x128xf32, #tpu.memory_space<vmem>>, vector<1x32xf32>
    %c9 = arith.constant 9 : index
    %c0_22 = arith.constant 0 : index
    %39 = vector.load %arg3[%c9, %c0_22] : memref<24x128xf32, #tpu.memory_space<vmem>>, vector<1x32xf32>
    %40 = arith.truncf %27 : vector<16x32xf32> to vector<16x32xbf16>
    %cst_23 = arith.constant dense<0.000000e+00> : vector<16x96xf32>
    %41 = tpu.matmul %40, %28, %cst_23 {dimension_numbers = #tpu.dot_dimension_numbers<[1], [0], [0], [1], [0, 0, 1, 1], [], []>} : vector<16x32xbf16>, vector<32x96xbf16>, vector<16x96xf32> -> vector<16x96xf32>
    %42 = vector.broadcast %32 : vector<1x96xf32> to vector<16x96xf32>
    %43 = arith.addf %41, %42 : vector<16x96xf32>
    %44 = arith.truncf %43 : vector<16x96xf32> to vector<16x96xbf16>
    %45 = vector.extract_strided_slice %44 {offsets = [0, 0], sizes = [16, 16], strides = [1, 1]} : vector<16x96xbf16> to vector<16x16xbf16>
    %46 = vector.extract_strided_slice %44 {offsets = [0, 32], sizes = [16, 16], strides = [1, 1]} : vector<16x96xbf16> to vector<16x16xbf16>
    %47 = vector.extract_strided_slice %44 {offsets = [0, 64], sizes = [16, 16], strides = [1, 1]} : vector<16x96xbf16> to vector<16x16xbf16>
    %cst_24 = arith.constant dense<0.000000e+00> : vector<16x16xf32>
    %48 = tpu.matmul %45, %46, %cst_24 {dimension_numbers = #tpu.dot_dimension_numbers<[1], [1], [0], [0], [0, 0, 1, 0], [], []>} : vector<16x16xbf16>, vector<16x16xbf16>, vector<16x16xf32> -> vector<16x16xf32>
    %cst_25 = arith.constant 2.500000e-01 : f32
    %49 = vector.broadcast %cst_25 : f32 to vector<16x16xf32>
    %50 = arith.mulf %48, %49 : vector<16x16xf32>
    %51 = arith.addf %50, %0 : vector<16x16xf32>
    %cst_26 = arith.constant dense<0xFF800000> : vector<16xf32>
    %52 = vector.multi_reduction <maximumf>, %51, %cst_26 [1] : vector<16x16xf32> to vector<16xf32>
    %53 = vector.shape_cast %52 : vector<16xf32> to vector<16x1xf32>
    %54 = vector.broadcast %53 : vector<16x1xf32> to vector<16x16xf32>
    %55 = arith.subf %51, %54 : vector<16x16xf32>
    %56 = math.exp %55 : vector<16x16xf32>
    %cst_27 = arith.constant dense<0.000000e+00> : vector<16xf32>
    %57 = vector.multi_reduction <add>, %56, %cst_27 [1] : vector<16x16xf32> to vector<16xf32>
    %58 = vector.shape_cast %57 : vector<16xf32> to vector<16x1xf32>
    %59 = tpu.reciprocal %58 {approx = true} : vector<16x1xf32> -> vector<16x1xf32>
    %60 = vector.broadcast %59 : vector<16x1xf32> to vector<16x16xf32>
    %61 = arith.mulf %56, %60 : vector<16x16xf32>
    %62 = arith.truncf %61 : vector<16x16xf32> to vector<16x16xbf16>
    %cst_28 = arith.constant dense<0.000000e+00> : vector<16x16xf32>
    %63 = tpu.matmul %62, %47, %cst_28 {dimension_numbers = #tpu.dot_dimension_numbers<[1], [0], [0], [1], [0, 0, 1, 1], [], []>} : vector<16x16xbf16>, vector<16x16xbf16>, vector<16x16xf32> -> vector<16x16xf32>
    %64 = arith.truncf %63 : vector<16x16xf32> to vector<16x16xbf16>
    %65 = vector.extract_strided_slice %29 {offsets = [0, 0], sizes = [16, 32], strides = [1, 1]} : vector<32x32xbf16> to vector<16x32xbf16>
    %cst_29 = arith.constant dense<0.000000e+00> : vector<16x32xf32>
    %66 = tpu.matmul %64, %65, %cst_29 {dimension_numbers = #tpu.dot_dimension_numbers<[1], [0], [0], [1], [0, 0, 1, 1], [], []>} : vector<16x16xbf16>, vector<16x32xbf16>, vector<16x32xf32> -> vector<16x32xf32>
    %67 = vector.broadcast %33 : vector<1x32xf32> to vector<16x32xf32>
    %68 = arith.addf %67, %66 : vector<16x32xf32>
    %69 = vector.extract_strided_slice %44 {offsets = [0, 16], sizes = [16, 16], strides = [1, 1]} : vector<16x96xbf16> to vector<16x16xbf16>
    %70 = vector.extract_strided_slice %44 {offsets = [0, 48], sizes = [16, 16], strides = [1, 1]} : vector<16x96xbf16> to vector<16x16xbf16>
    %71 = vector.extract_strided_slice %44 {offsets = [0, 80], sizes = [16, 16], strides = [1, 1]} : vector<16x96xbf16> to vector<16x16xbf16>
    %cst_30 = arith.constant dense<0.000000e+00> : vector<16x16xf32>
    %72 = tpu.matmul %69, %70, %cst_30 {dimension_numbers = #tpu.dot_dimension_numbers<[1], [1], [0], [0], [0, 0, 1, 0], [], []>} : vector<16x16xbf16>, vector<16x16xbf16>, vector<16x16xf32> -> vector<16x16xf32>
    %cst_31 = arith.constant 2.500000e-01 : f32
    %73 = vector.broadcast %cst_31 : f32 to vector<16x16xf32>
    %74 = arith.mulf %72, %73 : vector<16x16xf32>
    %75 = arith.addf %74, %0 : vector<16x16xf32>
    %cst_32 = arith.constant dense<0xFF800000> : vector<16xf32>
    %76 = vector.multi_reduction <maximumf>, %75, %cst_32 [1] : vector<16x16xf32> to vector<16xf32>
    %77 = vector.shape_cast %76 : vector<16xf32> to vector<16x1xf32>
    %78 = vector.broadcast %77 : vector<16x1xf32> to vector<16x16xf32>
    %79 = arith.subf %75, %78 : vector<16x16xf32>
    %80 = math.exp %79 : vector<16x16xf32>
    %cst_33 = arith.constant dense<0.000000e+00> : vector<16xf32>
    %81 = vector.multi_reduction <add>, %80, %cst_33 [1] : vector<16x16xf32> to vector<16xf32>
    %82 = vector.shape_cast %81 : vector<16xf32> to vector<16x1xf32>
    %83 = tpu.reciprocal %82 {approx = true} : vector<16x1xf32> -> vector<16x1xf32>
    %84 = vector.broadcast %83 : vector<16x1xf32> to vector<16x16xf32>
    %85 = arith.mulf %80, %84 : vector<16x16xf32>
    %86 = arith.truncf %85 : vector<16x16xf32> to vector<16x16xbf16>
    %cst_34 = arith.constant dense<0.000000e+00> : vector<16x16xf32>
    %87 = tpu.matmul %86, %71, %cst_34 {dimension_numbers = #tpu.dot_dimension_numbers<[1], [0], [0], [1], [0, 0, 1, 1], [], []>} : vector<16x16xbf16>, vector<16x16xbf16>, vector<16x16xf32> -> vector<16x16xf32>
    %88 = arith.truncf %87 : vector<16x16xf32> to vector<16x16xbf16>
    %89 = vector.extract_strided_slice %29 {offsets = [16, 0], sizes = [16, 32], strides = [1, 1]} : vector<32x32xbf16> to vector<16x32xbf16>
    %cst_35 = arith.constant dense<0.000000e+00> : vector<16x32xf32>
    %90 = tpu.matmul %88, %89, %cst_35 {dimension_numbers = #tpu.dot_dimension_numbers<[1], [0], [0], [1], [0, 0, 1, 1], [], []>} : vector<16x16xbf16>, vector<16x32xbf16>, vector<16x32xf32> -> vector<16x32xf32>
    %91 = arith.addf %68, %90 : vector<16x32xf32>
    %92 = arith.addf %27, %91 : vector<16x32xf32>
    %cst_36 = arith.constant dense<0.000000e+00> : vector<16xf32>
    %93 = vector.multi_reduction <add>, %92, %cst_36 [1] : vector<16x32xf32> to vector<16xf32>
    %94 = vector.shape_cast %93 : vector<16xf32> to vector<16x1xf32>
    %cst_37 = arith.constant 3.200000e+01 : f32
    %95 = vector.broadcast %cst_37 : f32 to vector<16x1xf32>
    %96 = arith.divf %94, %95 : vector<16x1xf32>
    %97 = vector.broadcast %96 : vector<16x1xf32> to vector<16x32xf32>
    %98 = arith.subf %92, %97 : vector<16x32xf32>
    %99 = vector.broadcast %96 : vector<16x1xf32> to vector<16x32xf32>
    %100 = arith.subf %92, %99 : vector<16x32xf32>
    %101 = arith.mulf %98, %100 : vector<16x32xf32>
    %cst_38 = arith.constant dense<0.000000e+00> : vector<16xf32>
    %102 = vector.multi_reduction <add>, %101, %cst_38 [1] : vector<16x32xf32> to vector<16xf32>
    %103 = vector.shape_cast %102 : vector<16xf32> to vector<16x1xf32>
    %cst_39 = arith.constant 3.200000e+01 : f32
    %104 = vector.broadcast %cst_39 : f32 to vector<16x1xf32>
    %105 = arith.divf %103, %104 : vector<16x1xf32>
    %106 = vector.broadcast %96 : vector<16x1xf32> to vector<16x32xf32>
    %107 = arith.subf %92, %106 : vector<16x32xf32>
    %cst_40 = arith.constant 9.99999974E-6 : f32
    %108 = vector.broadcast %cst_40 : f32 to vector<16x1xf32>
    %109 = arith.addf %105, %108 : vector<16x1xf32>
    %110 = math.rsqrt %109 : vector<16x1xf32>
    %111 = vector.broadcast %110 : vector<16x1xf32> to vector<16x32xf32>
    %112 = arith.mulf %107, %111 : vector<16x32xf32>
    %113 = vector.broadcast %34 : vector<1x32xf32> to vector<16x32xf32>
    %114 = arith.mulf %112, %113 : vector<16x32xf32>
    %115 = vector.broadcast %35 : vector<1x32xf32> to vector<16x32xf32>
    %116 = arith.addf %114, %115 : vector<16x32xf32>
    %117 = arith.truncf %116 : vector<16x32xf32> to vector<16x32xbf16>
    %cst_41 = arith.constant dense<0.000000e+00> : vector<16x128xf32>
    %118 = tpu.matmul %117, %30, %cst_41 {dimension_numbers = #tpu.dot_dimension_numbers<[1], [0], [0], [1], [0, 0, 1, 1], [], []>} : vector<16x32xbf16>, vector<32x128xbf16>, vector<16x128xf32> -> vector<16x128xf32>
    %119 = vector.broadcast %36 : vector<1x128xf32> to vector<16x128xf32>
    %120 = arith.addf %118, %119 : vector<16x128xf32>
    %cst_42 = arith.constant 0.000000e+00 : f32
    %121 = vector.broadcast %cst_42 : f32 to vector<16x128xf32>
    %122 = arith.maximumf %120, %121 : vector<16x128xf32>
    %123 = arith.truncf %122 : vector<16x128xf32> to vector<16x128xbf16>
    %cst_43 = arith.constant dense<0.000000e+00> : vector<16x32xf32>
    %124 = tpu.matmul %123, %31, %cst_43 {dimension_numbers = #tpu.dot_dimension_numbers<[1], [0], [0], [1], [0, 0, 1, 1], [], []>} : vector<16x128xbf16>, vector<128x32xbf16>, vector<16x32xf32> -> vector<16x32xf32>
    %125 = vector.broadcast %37 : vector<1x32xf32> to vector<16x32xf32>
    %126 = arith.addf %124, %125 : vector<16x32xf32>
    %127 = arith.addf %116, %126 : vector<16x32xf32>
    %cst_44 = arith.constant dense<0.000000e+00> : vector<16xf32>
    %128 = vector.multi_reduction <add>, %127, %cst_44 [1] : vector<16x32xf32> to vector<16xf32>
    %129 = vector.shape_cast %128 : vector<16xf32> to vector<16x1xf32>
    %cst_45 = arith.constant 3.200000e+01 : f32
    %130 = vector.broadcast %cst_45 : f32 to vector<16x1xf32>
    %131 = arith.divf %129, %130 : vector<16x1xf32>
    %132 = vector.broadcast %131 : vector<16x1xf32> to vector<16x32xf32>
    %133 = arith.subf %127, %132 : vector<16x32xf32>
    %134 = vector.broadcast %131 : vector<16x1xf32> to vector<16x32xf32>
    %135 = arith.subf %127, %134 : vector<16x32xf32>
    %136 = arith.mulf %133, %135 : vector<16x32xf32>
    %cst_46 = arith.constant dense<0.000000e+00> : vector<16xf32>
    %137 = vector.multi_reduction <add>, %136, %cst_46 [1] : vector<16x32xf32> to vector<16xf32>
    %138 = vector.shape_cast %137 : vector<16xf32> to vector<16x1xf32>
    %cst_47 = arith.constant 3.200000e+01 : f32
    %139 = vector.broadcast %cst_47 : f32 to vector<16x1xf32>
    %140 = arith.divf %138, %139 : vector<16x1xf32>
    %141 = vector.broadcast %131 : vector<16x1xf32> to vector<16x32xf32>
    %142 = arith.subf %127, %141 : vector<16x32xf32>
    %cst_48 = arith.constant 9.99999974E-6 : f32
    %143 = vector.broadcast %cst_48 : f32 to vector<16x1xf32>
    %144 = arith.addf %140, %143 : vector<16x1xf32>
    %145 = math.rsqrt %144 : vector<16x1xf32>
    %146 = vector.broadcast %145 : vector<16x1xf32> to vector<16x32xf32>
    %147 = arith.mulf %142, %146 : vector<16x32xf32>
    %148 = vector.broadcast %38 : vector<1x32xf32> to vector<16x32xf32>
    %149 = arith.mulf %147, %148 : vector<16x32xf32>
    %150 = vector.broadcast %39 : vector<1x32xf32> to vector<16x32xf32>
    %151 = arith.addf %149, %150 : vector<16x32xf32>
    %c288 = arith.constant 288 : index
    %c0_49 = arith.constant 0 : index
    %152 = vector.load %arg2[%c288, %c0_49] : memref<512x128xbf16, #tpu.memory_space<vmem>>, vector<32x96xbf16>
    %c320 = arith.constant 320 : index
    %c0_50 = arith.constant 0 : index
    %153 = vector.load %arg2[%c320, %c0_50] : memref<512x128xbf16, #tpu.memory_space<vmem>>, vector<32x32xbf16>
    %c352 = arith.constant 352 : index
    %c0_51 = arith.constant 0 : index
    %154 = vector.load %arg2[%c352, %c0_51] : memref<512x128xbf16, #tpu.memory_space<vmem>>, vector<32x128xbf16>
    %c384 = arith.constant 384 : index
    %c0_52 = arith.constant 0 : index
    %155 = vector.load %arg2[%c384, %c0_52] : memref<512x128xbf16, #tpu.memory_space<vmem>>, vector<128x32xbf16>
    %c10 = arith.constant 10 : index
    %c0_53 = arith.constant 0 : index
    %156 = vector.load %arg3[%c10, %c0_53] : memref<24x128xf32, #tpu.memory_space<vmem>>, vector<1x96xf32>
    %c11 = arith.constant 11 : index
    %c0_54 = arith.constant 0 : index
    %157 = vector.load %arg3[%c11, %c0_54] : memref<24x128xf32, #tpu.memory_space<vmem>>, vector<1x32xf32>
    %c12 = arith.constant 12 : index
    %c0_55 = arith.constant 0 : index
    %158 = vector.load %arg3[%c12, %c0_55] : memref<24x128xf32, #tpu.memory_space<vmem>>, vector<1x32xf32>
    %c13 = arith.constant 13 : index
    %c0_56 = arith.constant 0 : index
    %159 = vector.load %arg3[%c13, %c0_56] : memref<24x128xf32, #tpu.memory_space<vmem>>, vector<1x32xf32>
    %c14 = arith.constant 14 : index
    %c0_57 = arith.constant 0 : index
    %160 = vector.load %arg3[%c14, %c0_57] : memref<24x128xf32, #tpu.memory_space<vmem>>, vector<1x128xf32>
    %c15 = arith.constant 15 : index
    %c0_58 = arith.constant 0 : index
    %161 = vector.load %arg3[%c15, %c0_58] : memref<24x128xf32, #tpu.memory_space<vmem>>, vector<1x32xf32>
    %c16_59 = arith.constant 16 : index
    %c0_60 = arith.constant 0 : index
    %162 = vector.load %arg3[%c16_59, %c0_60] : memref<24x128xf32, #tpu.memory_space<vmem>>, vector<1x32xf32>
    %c17_61 = arith.constant 17 : index
    %c0_62 = arith.constant 0 : index
    %163 = vector.load %arg3[%c17_61, %c0_62] : memref<24x128xf32, #tpu.memory_space<vmem>>, vector<1x32xf32>
    %164 = arith.truncf %151 : vector<16x32xf32> to vector<16x32xbf16>
    %cst_63 = arith.constant dense<0.000000e+00> : vector<16x96xf32>
    %165 = tpu.matmul %164, %152, %cst_63 {dimension_numbers = #tpu.dot_dimension_numbers<[1], [0], [0], [1], [0, 0, 1, 1], [], []>} : vector<16x32xbf16>, vector<32x96xbf16>, vector<16x96xf32> -> vector<16x96xf32>
    %166 = vector.broadcast %156 : vector<1x96xf32> to vector<16x96xf32>
    %167 = arith.addf %165, %166 : vector<16x96xf32>
    %168 = arith.truncf %167 : vector<16x96xf32> to vector<16x96xbf16>
    %169 = vector.extract_strided_slice %168 {offsets = [0, 0], sizes = [16, 16], strides = [1, 1]} : vector<16x96xbf16> to vector<16x16xbf16>
    %170 = vector.extract_strided_slice %168 {offsets = [0, 32], sizes = [16, 16], strides = [1, 1]} : vector<16x96xbf16> to vector<16x16xbf16>
    %171 = vector.extract_strided_slice %168 {offsets = [0, 64], sizes = [16, 16], strides = [1, 1]} : vector<16x96xbf16> to vector<16x16xbf16>
    %cst_64 = arith.constant dense<0.000000e+00> : vector<16x16xf32>
    %172 = tpu.matmul %169, %170, %cst_64 {dimension_numbers = #tpu.dot_dimension_numbers<[1], [1], [0], [0], [0, 0, 1, 0], [], []>} : vector<16x16xbf16>, vector<16x16xbf16>, vector<16x16xf32> -> vector<16x16xf32>
    %cst_65 = arith.constant 2.500000e-01 : f32
    %173 = vector.broadcast %cst_65 : f32 to vector<16x16xf32>
    %174 = arith.mulf %172, %173 : vector<16x16xf32>
    %175 = arith.addf %174, %0 : vector<16x16xf32>
    %cst_66 = arith.constant dense<0xFF800000> : vector<16xf32>
    %176 = vector.multi_reduction <maximumf>, %175, %cst_66 [1] : vector<16x16xf32> to vector<16xf32>
    %177 = vector.shape_cast %176 : vector<16xf32> to vector<16x1xf32>
    %178 = vector.broadcast %177 : vector<16x1xf32> to vector<16x16xf32>
    %179 = arith.subf %175, %178 : vector<16x16xf32>
    %180 = math.exp %179 : vector<16x16xf32>
    %cst_67 = arith.constant dense<0.000000e+00> : vector<16xf32>
    %181 = vector.multi_reduction <add>, %180, %cst_67 [1] : vector<16x16xf32> to vector<16xf32>
    %182 = vector.shape_cast %181 : vector<16xf32> to vector<16x1xf32>
    %183 = tpu.reciprocal %182 {approx = true} : vector<16x1xf32> -> vector<16x1xf32>
    %184 = vector.broadcast %183 : vector<16x1xf32> to vector<16x16xf32>
    %185 = arith.mulf %180, %184 : vector<16x16xf32>
    %186 = arith.truncf %185 : vector<16x16xf32> to vector<16x16xbf16>
    %cst_68 = arith.constant dense<0.000000e+00> : vector<16x16xf32>
    %187 = tpu.matmul %186, %171, %cst_68 {dimension_numbers = #tpu.dot_dimension_numbers<[1], [0], [0], [1], [0, 0, 1, 1], [], []>} : vector<16x16xbf16>, vector<16x16xbf16>, vector<16x16xf32> -> vector<16x16xf32>
    %188 = arith.truncf %187 : vector<16x16xf32> to vector<16x16xbf16>
    %189 = vector.extract_strided_slice %153 {offsets = [0, 0], sizes = [16, 32], strides = [1, 1]} : vector<32x32xbf16> to vector<16x32xbf16>
    %cst_69 = arith.constant dense<0.000000e+00> : vector<16x32xf32>
    %190 = tpu.matmul %188, %189, %cst_69 {dimension_numbers = #tpu.dot_dimension_numbers<[1], [0], [0], [1], [0, 0, 1, 1], [], []>} : vector<16x16xbf16>, vector<16x32xbf16>, vector<16x32xf32> -> vector<16x32xf32>
    %191 = vector.broadcast %157 : vector<1x32xf32> to vector<16x32xf32>
    %192 = arith.addf %191, %190 : vector<16x32xf32>
    %193 = vector.extract_strided_slice %168 {offsets = [0, 16], sizes = [16, 16], strides = [1, 1]} : vector<16x96xbf16> to vector<16x16xbf16>
    %194 = vector.extract_strided_slice %168 {offsets = [0, 48], sizes = [16, 16], strides = [1, 1]} : vector<16x96xbf16> to vector<16x16xbf16>
    %195 = vector.extract_strided_slice %168 {offsets = [0, 80], sizes = [16, 16], strides = [1, 1]} : vector<16x96xbf16> to vector<16x16xbf16>
    %cst_70 = arith.constant dense<0.000000e+00> : vector<16x16xf32>
    %196 = tpu.matmul %193, %194, %cst_70 {dimension_numbers = #tpu.dot_dimension_numbers<[1], [1], [0], [0], [0, 0, 1, 0], [], []>} : vector<16x16xbf16>, vector<16x16xbf16>, vector<16x16xf32> -> vector<16x16xf32>
    %cst_71 = arith.constant 2.500000e-01 : f32
    %197 = vector.broadcast %cst_71 : f32 to vector<16x16xf32>
    %198 = arith.mulf %196, %197 : vector<16x16xf32>
    %199 = arith.addf %198, %0 : vector<16x16xf32>
    %cst_72 = arith.constant dense<0xFF800000> : vector<16xf32>
    %200 = vector.multi_reduction <maximumf>, %199, %cst_72 [1] : vector<16x16xf32> to vector<16xf32>
    %201 = vector.shape_cast %200 : vector<16xf32> to vector<16x1xf32>
    %202 = vector.broadcast %201 : vector<16x1xf32> to vector<16x16xf32>
    %203 = arith.subf %199, %202 : vector<16x16xf32>
    %204 = math.exp %203 : vector<16x16xf32>
    %cst_73 = arith.constant dense<0.000000e+00> : vector<16xf32>
    %205 = vector.multi_reduction <add>, %204, %cst_73 [1] : vector<16x16xf32> to vector<16xf32>
    %206 = vector.shape_cast %205 : vector<16xf32> to vector<16x1xf32>
    %207 = tpu.reciprocal %206 {approx = true} : vector<16x1xf32> -> vector<16x1xf32>
    %208 = vector.broadcast %207 : vector<16x1xf32> to vector<16x16xf32>
    %209 = arith.mulf %204, %208 : vector<16x16xf32>
    %210 = arith.truncf %209 : vector<16x16xf32> to vector<16x16xbf16>
    %cst_74 = arith.constant dense<0.000000e+00> : vector<16x16xf32>
    %211 = tpu.matmul %210, %195, %cst_74 {dimension_numbers = #tpu.dot_dimension_numbers<[1], [0], [0], [1], [0, 0, 1, 1], [], []>} : vector<16x16xbf16>, vector<16x16xbf16>, vector<16x16xf32> -> vector<16x16xf32>
    %212 = arith.truncf %211 : vector<16x16xf32> to vector<16x16xbf16>
    %213 = vector.extract_strided_slice %153 {offsets = [16, 0], sizes = [16, 32], strides = [1, 1]} : vector<32x32xbf16> to vector<16x32xbf16>
    %cst_75 = arith.constant dense<0.000000e+00> : vector<16x32xf32>
    %214 = tpu.matmul %212, %213, %cst_75 {dimension_numbers = #tpu.dot_dimension_numbers<[1], [0], [0], [1], [0, 0, 1, 1], [], []>} : vector<16x16xbf16>, vector<16x32xbf16>, vector<16x32xf32> -> vector<16x32xf32>
    %215 = arith.addf %192, %214 : vector<16x32xf32>
    %216 = arith.addf %151, %215 : vector<16x32xf32>
    %cst_76 = arith.constant dense<0.000000e+00> : vector<16xf32>
    %217 = vector.multi_reduction <add>, %216, %cst_76 [1] : vector<16x32xf32> to vector<16xf32>
    %218 = vector.shape_cast %217 : vector<16xf32> to vector<16x1xf32>
    %cst_77 = arith.constant 3.200000e+01 : f32
    %219 = vector.broadcast %cst_77 : f32 to vector<16x1xf32>
    %220 = arith.divf %218, %219 : vector<16x1xf32>
    %221 = vector.broadcast %220 : vector<16x1xf32> to vector<16x32xf32>
    %222 = arith.subf %216, %221 : vector<16x32xf32>
    %223 = vector.broadcast %220 : vector<16x1xf32> to vector<16x32xf32>
    %224 = arith.subf %216, %223 : vector<16x32xf32>
    %225 = arith.mulf %222, %224 : vector<16x32xf32>
    %cst_78 = arith.constant dense<0.000000e+00> : vector<16xf32>
    %226 = vector.multi_reduction <add>, %225, %cst_78 [1] : vector<16x32xf32> to vector<16xf32>
    %227 = vector.shape_cast %226 : vector<16xf32> to vector<16x1xf32>
    %cst_79 = arith.constant 3.200000e+01 : f32
    %228 = vector.broadcast %cst_79 : f32 to vector<16x1xf32>
    %229 = arith.divf %227, %228 : vector<16x1xf32>
    %230 = vector.broadcast %220 : vector<16x1xf32> to vector<16x32xf32>
    %231 = arith.subf %216, %230 : vector<16x32xf32>
    %cst_80 = arith.constant 9.99999974E-6 : f32
    %232 = vector.broadcast %cst_80 : f32 to vector<16x1xf32>
    %233 = arith.addf %229, %232 : vector<16x1xf32>
    %234 = math.rsqrt %233 : vector<16x1xf32>
    %235 = vector.broadcast %234 : vector<16x1xf32> to vector<16x32xf32>
    %236 = arith.mulf %231, %235 : vector<16x32xf32>
    %237 = vector.broadcast %158 : vector<1x32xf32> to vector<16x32xf32>
    %238 = arith.mulf %236, %237 : vector<16x32xf32>
    %239 = vector.broadcast %159 : vector<1x32xf32> to vector<16x32xf32>
    %240 = arith.addf %238, %239 : vector<16x32xf32>
    %241 = arith.truncf %240 : vector<16x32xf32> to vector<16x32xbf16>
    %cst_81 = arith.constant dense<0.000000e+00> : vector<16x128xf32>
    %242 = tpu.matmul %241, %154, %cst_81 {dimension_numbers = #tpu.dot_dimension_numbers<[1], [0], [0], [1], [0, 0, 1, 1], [], []>} : vector<16x32xbf16>, vector<32x128xbf16>, vector<16x128xf32> -> vector<16x128xf32>
    %243 = vector.broadcast %160 : vector<1x128xf32> to vector<16x128xf32>
    %244 = arith.addf %242, %243 : vector<16x128xf32>
    %cst_82 = arith.constant 0.000000e+00 : f32
    %245 = vector.broadcast %cst_82 : f32 to vector<16x128xf32>
    %246 = arith.maximumf %244, %245 : vector<16x128xf32>
    %247 = arith.truncf %246 : vector<16x128xf32> to vector<16x128xbf16>
    %cst_83 = arith.constant dense<0.000000e+00> : vector<16x32xf32>
    %248 = tpu.matmul %247, %155, %cst_83 {dimension_numbers = #tpu.dot_dimension_numbers<[1], [0], [0], [1], [0, 0, 1, 1], [], []>} : vector<16x128xbf16>, vector<128x32xbf16>, vector<16x32xf32> -> vector<16x32xf32>
    %249 = vector.broadcast %161 : vector<1x32xf32> to vector<16x32xf32>
    %250 = arith.addf %248, %249 : vector<16x32xf32>
    %251 = arith.addf %240, %250 : vector<16x32xf32>
    %cst_84 = arith.constant dense<0.000000e+00> : vector<16xf32>
    %252 = vector.multi_reduction <add>, %251, %cst_84 [1] : vector<16x32xf32> to vector<16xf32>
    %253 = vector.shape_cast %252 : vector<16xf32> to vector<16x1xf32>
    %cst_85 = arith.constant 3.200000e+01 : f32
    %254 = vector.broadcast %cst_85 : f32 to vector<16x1xf32>
    %255 = arith.divf %253, %254 : vector<16x1xf32>
    %256 = vector.broadcast %255 : vector<16x1xf32> to vector<16x32xf32>
    %257 = arith.subf %251, %256 : vector<16x32xf32>
    %258 = vector.broadcast %255 : vector<16x1xf32> to vector<16x32xf32>
    %259 = arith.subf %251, %258 : vector<16x32xf32>
    %260 = arith.mulf %257, %259 : vector<16x32xf32>
    %cst_86 = arith.constant dense<0.000000e+00> : vector<16xf32>
    %261 = vector.multi_reduction <add>, %260, %cst_86 [1] : vector<16x32xf32> to vector<16xf32>
    %262 = vector.shape_cast %261 : vector<16xf32> to vector<16x1xf32>
    %cst_87 = arith.constant 3.200000e+01 : f32
    %263 = vector.broadcast %cst_87 : f32 to vector<16x1xf32>
    %264 = arith.divf %262, %263 : vector<16x1xf32>
    %265 = vector.broadcast %255 : vector<16x1xf32> to vector<16x32xf32>
    %266 = arith.subf %251, %265 : vector<16x32xf32>
    %cst_88 = arith.constant 9.99999974E-6 : f32
    %267 = vector.broadcast %cst_88 : f32 to vector<16x1xf32>
    %268 = arith.addf %264, %267 : vector<16x1xf32>
    %269 = math.rsqrt %268 : vector<16x1xf32>
    %270 = vector.broadcast %269 : vector<16x1xf32> to vector<16x32xf32>
    %271 = arith.mulf %266, %270 : vector<16x32xf32>
    %272 = vector.broadcast %162 : vector<1x32xf32> to vector<16x32xf32>
    %273 = arith.mulf %271, %272 : vector<16x32xf32>
    %274 = vector.broadcast %163 : vector<1x32xf32> to vector<16x32xf32>
    %275 = arith.addf %273, %274 : vector<16x32xf32>
    %c0_89 = arith.constant 0 : index
    %c0_90 = arith.constant 0 : index
    %276 = vector.load %arg4[%c0_89, %c0_90] : memref<16x32xf32, #tpu.memory_space<vmem>>, vector<16x32xf32>
    tpu.vector_store %arg4[%c0_89, %c0_90], %275 {strides = array<i32>} : memref<16x32xf32, #tpu.memory_space<vmem>>, vector<16x32xf32>,
    return
  }
  func.func @transform_0(%arg0: i32) -> (i32, i32) {
    %c0_i32 = arith.constant 0 : i32
    %c0_i32_0 = arith.constant 0 : i32
    %c0_i32_1 = arith.constant 0 : i32
    return %c0_i32, %c0_i32_0 : i32, i32
  }
  func.func @transform_1(%arg0: i32) -> (i32, i32) {
    %c0_i32 = arith.constant 0 : i32
    %c0_i32_0 = arith.constant 0 : i32
    %c0_i32_1 = arith.constant 0 : i32
    return %c0_i32, %c0_i32_0 : i32, i32
  }
  func.func @transform_2(%arg0: i32) -> (i32, i32) {
    %c0_i32 = arith.constant 0 : i32
    %c0_i32_0 = arith.constant 0 : i32
    %c0_i32_1 = arith.constant 0 : i32
    return %c0_i32, %c0_i32_0 : i32, i32
  }
  func.func @transform_3(%arg0: i32) -> (i32, i32) {
    %c0_i32 = arith.constant 0 : i32
    %c0_i32_0 = arith.constant 0 : i32
    %c0_i32_1 = arith.constant 0 : i32
    return %c0_i32, %c0_i32_0 : i32, i32
  }
}

</mosaic_0001>

<bundles_post_ra>
// kernel: tpu_custom_call.1
= control target key start
LH: loop header
LB: loop body
LE: loop exit
PB: predicated region body
PF: predicated region fallthrough
CT: control target
= control target key end

     0   :  { %8 = vsyncpa [#allocation3], 0  ;;  %s2323_s0 = inlined_call_operand.hbm [shape: f32[16,20], index: 0, kind: input, shape index: {}]   ;;  %s2324_s1 = inlined_call_operand.hbm [shape: bf16[512,128], index: 1, kind: input, shape index: {}]   ;;  %s2325_s2 = inlined_call_operand.hbm [shape: f32[24,128], index: 2, kind: input, shape index: {}]   ;;  %s2326_s3 = inlined_call_operand.hbm [shape: f32[16,32], index: 3, kind: output, shape index: {}]  }
   0x1   :  { %9 = vsyncpa [#allocation6], 0 }
   0x2   :  { %10 = vsyncpa [#allocation4], 0  ;;  %s2071_s12 = smov [#allocation5]  }
   0x3   :  { %s28_s13 = sshll.u32 %s2071_s12, 4  ;;  %s29_s13 = int_to_ptr.vmem [resolvable:$true] %s28_s13 }
   0x4   :  { %s1993_s14 = scalar_lea.vmem %s29_s13, 4096  ;;  %p1998_p1 = scmp.lt.s32.totalorder %s29_s13, %s29_s13 }
   0x5   :  { %p1994_p0 = scmp.ne.s32.totalorder %s29_s13, %s1993_s14  ;;  %p1999_p2 = scmp.lt.s32.totalorder %s1993_s14, %s1993_s14 }
   0x7   :  { %p2000_p3 = por %p1999_p2, %p1998_p1 }
   0x9   :  { %p2001_p4 = pnand %p2000_p3, %p1994_p0 }
   0xb   :  { %2004 = shalt.err (!%p2001_p4)
}
   0xc   :  { %s2072_s15 = smov 64   ;;  %s2073_s16 = smov 4  }
   0xd   :  { %34 = dma.hbm_to_vmem [thread:$0]  %s2324_s1, 4096, %s29_s13, [#allocation6], %s2072_s15, %s2072_s15, %s2073_s16  }
   0xe   :  { %s2074_s19 = smov [#allocation2]  }
   0xf   :  { %s16_s20 = sshll.u32 %s2074_s19, 4  ;;  %s17_s20 = int_to_ptr.vmem [resolvable:$true] %s16_s20 }
  0x10   :  { %s2013_s21 = scalar_lea.vmem %s17_s20, 256  ;;  %p2018_p6 = scmp.lt.s32.totalorder %s17_s20, %s17_s20 }
  0x11   :  { %p2014_p5 = scmp.ne.s32.totalorder %s17_s20, %s2013_s21  ;;  %p2019_p7 = scmp.lt.s32.totalorder %s2013_s21, %s2013_s21 }
  0x13   :  { %p2020_p8 = por %p2019_p7, %p2018_p6 }
  0x15   :  { %p2021_p9 = pnand %p2020_p8, %p2014_p5 }
  0x17   :  { %2024 = shalt.err (!%p2021_p9)
}
  0x18   :  { %s2075_s22 = smov 128   ;;  %s2076_s23 = smov 8  }
  0x19   :  { %22 = dma.hbm_to_vmem [thread:$0]  %s2323_s0, 256, %s17_s20, [#allocation3], %s2075_s22, %s2075_s22, %s2076_s23  }
  0x1a   :  { %s2077_s1 = smov [#allocation7]  }
  0x1b   :  { %s40_s26 = sshll.u32 %s2077_s1, 4  ;;  %s41_s26 = int_to_ptr.vmem [resolvable:$true] %s40_s26 }
  0x1c   :  { %s2033_s27 = scalar_lea.vmem %s41_s26, 384  ;;  %p2038_p11 = scmp.lt.s32.totalorder %s41_s26, %s41_s26 }
  0x1d   :  { %p2034_p10 = scmp.ne.s32.totalorder %s41_s26, %s2033_s27  ;;  %p2039_p12 = scmp.lt.s32.totalorder %s2033_s27, %s2033_s27 }
  0x1f   :  { %p2040_p13 = por %p2039_p12, %p2038_p11 }
  0x21   :  { %p2041_p0 = pnand %p2040_p13, %p2034_p10 }
  0x23   :  { %2044 = shalt.err (!%p2041_p0)
}
  0x24   :  { %46 = dma.hbm_to_vmem [thread:$0]  %s2325_s2, 384, %s41_s26, [#allocation6], %s2075_s22, %s2075_s22, %s2076_s23  }
  0x25   :  { %2065 = dma.done.wait [#allocation3], 256  }
  0x26   :  { %2066 = vsyncadd [#allocation3], 4294967040 }
  0x27   :  { %2067 = dma.done.wait [#allocation6], 4480  }
  0x28   :  { %2068 = vsyncadd [#allocation6], 4294962816  ;;  %v2078_v0 = vmov 16   ;;  %v2079_v1 = vmov 18   ;;  %v2080_v2 = vmov 0.0   ;;  %v2127_v3 = vld [vmem:[#allocation2] sm:$0xff]  ;;  %v61_v16 = vlaneseq }
  0x29   :  { %1901 = vset.pattern.permute.xlu0 %v2078_v0  ;;  %1902 = vset.pattern.permute.xlu1 %v2079_v1  ;;  %v2129_v4 = vld [vmem:[#allocation2 + $0x8] sm:$0xff]  ;;  %v1880_v5 = vtrunc.f32 %v2127_v3  ;;  %v1906_v10 = vld [vmem:[#allocation5 + $0x10] sm:$0xff]   ;;  %v1907_v13 = vld [vmem:[#allocation5 + $0x8] sm:$0xff]   ;;  %vm2081_vm0 = vmmov 0   ;;  %v2082_v15 = vmov 17   ;;  %vm136_vm7 = vcmask 523264  }
  0x2a   :  { %1724 = vmatprep.subr.bf16.mxu1 %v2080_v2  ;;  %1750 = vmatprep.subr.bf16.mxu0 %v2080_v2  ;;  %v1882_v6 = vtrunc.f32 %v2129_v4  ;;  %v1905_v7 = vld [vmem:[#allocation5 + $0x18] sm:$0xff]   ;;  %v1908_v14 = vld [vmem:[#allocation5] sm:$0xff]   ;;  %v62_v17 = vand.u32 127, %v61_v16  ;;  %v1909_v25 = vld [vmem:[#allocation5 + $0x28] sm:$0xff]   ;;  %vm240_vm8 = vcmask 261120   ;;  %s2083_s0 = smov 96  }
  0x2b   :  { %v1881_v8 = vcvt.f32.s32 %v1880_v5  ;;  %1725 = vmatpush3.bf16.msra.mxu1 %v1905_v7  ;;  %1732 = vmatprep.mubr.msk.bf16.mxu1 %vm2081_vm0, %v2080_v2  ;;  %v1910_v26 = vld [vmem:[#allocation5 + $0x20] sm:$0xff]   ;;  %vm289_vm9 = vcmask 130048   ;;  %s2084_s2 = smov 112   ;;  %s2085_s30 = smov 80  }
  0x2c   :  { %v1883_v9 = vcvt.f32.s32 %v1882_v6  ;;  %1726 = vmatprep.subr.bf16.mxu1 %v2080_v2  ;;  %1752 = vmatprep.mubr.msk.bf16.mxu0 %vm2081_vm0, %v2080_v2  ;;  %v1598_v27 = vld [vmem:[#allocation7] ss:$0 sm:$0xff]  ;;  %v1604_v35 = vld [vmem:[#allocation7 + $0x1] ss:$0 sm:$0xff]  ;;  %v1605_v43 = vld [vmem:[#allocation7 + $0x2] ss:$0 sm:$0xff] }
  0x2d   :  { %64 = vperm.xlu0 %1901, %v1881_v8   ;;  %v71_v11 = vadd.s32 32, %v1881_v8  ;;  %s2086_s4 = smov 48   ;;  %s2087_s5 = smov [#allocation8]  }
  0x2e   :  { %v72_v12 = vadd.s32 32, %v1883_v9  ;;  %s1585_s6 = sshll.u32 %s2087_s5, 4  ;;  %s1586_s6 = int_to_ptr.vmem [resolvable:$true] %s1585_s6 }
  0x2f   :  { %74 = vperm.xlu1 %1902, %v71_v11   ;;  %1727 = vmatpush3.bf16.msra.mxu1 %v1906_v10  ;;  %s2045_s7 = scalar_lea.vmem %s1586_s6, 256  ;;  %p2050_p2 = scmp.lt.s32.totalorder %s1586_s6, %s1586_s6 }
  0x30   :  { %1728 = vmatprep.subr.bf16.mxu1 %v2080_v2  ;;  %p2046_p1 = scmp.ne.s32.totalorder %s1586_s6, %s2045_s7  ;;  %p2051_p3 = scmp.lt.s32.totalorder %s2045_s7, %s2045_s7 }
  0x31   :  { %67 = vperm.xlu0 %1901, %v1883_v9  }
  0x32   :  { %p2052_p4 = por %p2051_p3, %p2050_p2 }
  0x33   :  { %77 = vperm.xlu1 %1902, %v72_v12   ;;  %1729 = vmatpush3.bf16.msra.mxu1 %v1907_v13 }
  0x34   :  { %1730 = vmatprep.subr.bf16.mxu1 %v2080_v2  ;;  %p2053_p5 = pnand %p2052_p4, %p2046_p1 }
  0x35   :  { %1903 = vset.pattern.permute.xlu0 %v2082_v15 }
  0x36   :  { %98 = vperm.xlu0 %1903, %v2127_v3  }
  0x37   :  { %1731 = vmatpush3.bf16.msra.mxu1 %v1908_v14  ;;  %1904 = vset.pattern.permute.xlu1 %v2082_v15 }
  0x38   :  { %103 = vperm.xlu1 %1904, %v2129_v4   ;;  %1736 = vmatprep.subr.bf16.mxu1 %v2080_v2 }
  0xa8   :  { %v65_v18 = vpop.permute.xlu0 %64 }
  0xa9   :  { %vm69_vm1 = vcmp.eq.s32.totalorder %v62_v17, %v65_v18 }
  0xaa   :  { %v75_v19 = vpop.permute.xlu1 %74 }
  0xab   :  { %vm79_vm2 = vcmp.eq.s32.totalorder %v62_v17, %v75_v19 }
  0xac   :  { %v68_v20 = vpop.permute.xlu0 %67  ;;  %vm81_vm3 = vmor %vm69_vm1, %vm79_vm2 }
  0xad   :  { %vm70_vm4 = vcmp.eq.s32.totalorder %v62_v17, %v68_v20  ;;  %v83_v22 = vsel %vm81_vm3, 1.0, %v2080_v2 }
  0xae   :  { %v78_v21 = vpop.permute.xlu1 %77 }
  0xaf   :  { %vm80_vm5 = vcmp.eq.s32.totalorder %v62_v17, %v78_v21 }
  0xb0   :  { %vm82_vm6 = vmor %vm70_vm4, %vm80_vm5 }
  0xb1   :  { %v84_v23 = vsel %vm82_vm6, 1.0, %v2080_v2  ;;  %v99_v28 = vpop.permute.xlu0 %98 }
  0xb2   :  { %v85_v24 = vpack.c.bf16 %v84_v23, %v83_v22  ;;  %v110_v30 = vmul.f32 %v1598_v27, %v99_v28  ;;  %v1911_v22 = vld [vmem:[#allocation5 + $0x30] sm:$0xff]  }
  0xb3   :  { %v104_v29 = vpop.permute.xlu1 %103 }
  0xb4   :  { %1733 = vmatmul.mubr.msk.bf16.vlgmr.msra.gmra.mxu1 %vm136_vm7, %v85_v24  ;;  %v111_v32 = vmul.f32 %v1598_v27, %v104_v29 }
  0xb5   :  { %1740 = vmatprep.mubr.msk.bf16.mxu1 %vm2081_vm0, %v2080_v2  ;;  %1737 = vmatpush3.bf16.msra.mxu1 %v1909_v25 }
  0xb6   :  { %1738 = vmatprep.subr.bf16.mxu1 %v2080_v2 }
  0xb9   :  { %1739 = vmatpush3.bf16.msra.mxu1 %v1910_v26 }
  0xba   :  { %1744 = vmatprep.subr.bf16.mxu1 %v2080_v2 }
 0x174   :  { %v174_v31 = vpop.f32.mrf.mxu1 }
 0x175   :  { %v175_v34 = vadd.f32 %v174_v31, %v110_v30 }
 0x176   :  { %v1734_v33 = vpop.f32.mrf.mxu1 }
 0x177   :  { %v2149_v39 = vadd.f32 %v1604_v35, %v175_v34 }
 0x178   :  { %v177_v36 = vpop.f32.mrf.mxu1 }
 0x179   :  { %v178_v37 = vadd.f32 %v177_v36, %v111_v32 }
 0x17a   :  { %v1735_v38 = vpop.f32.mrf.mxu1 }
 0x17b   :  { %v2151_v40 = vadd.f32 %v1604_v35, %v178_v37 }
 0x17d   :  { %v223_v41 = vpack.c.bf16 %v2151_v40, %v2149_v39 }
 0x17f   :  { %1741 = vmatmul.mubr.msk.bf16.vlgmr.msra.gmra.mxu1 %vm240_vm8, %v223_v41 }
 0x180   :  { %1746 = vmatprep.mubr.msk.bf16.mxu1 %vm2081_vm0, %v2080_v2 }
 0x23f   :  { %v278_v42 = vpop.f32.mrf.mxu1 }
 0x240   :  { %v279_v46 = vadd.f32 %v1605_v43, %v278_v42 }
 0x241   :  { %v1742_v44 = vpop.f32.mrf.mxu1 }
 0x243   :  { %v281_v45 = vpop.f32.mrf.mxu1 }
 0x244   :  { %v282_v47 = vadd.f32 %v1605_v43, %v281_v45 }
 0x245   :  { %v1743_v48 = vpop.f32.mrf.mxu1 }
 0x246   :  { %v2158_v49 = vpack.c.bf16 %v282_v47, %v279_v46 }
 0x248   :  { %287 = vrot.lane.b32.xlu1 %v2158_v49, %s2083_s0 }
 0x2ba   :  { %v288_v50 = vpop.permute.xlu1 %287 }
 0x2bb   :  { %v294_v51 = vsel %vm289_vm9, %v288_v50, 0 }
 0x2bc   :  { %1745 = vmatpush3.bf16.xpose.msra.mxu1 %v294_v51 }
 0x2bd   :  { %1756 = vmatprep.subr.bf16.mxu1 %v2080_v2 }
 0x2c3   :  { %1747 = vmatmul.mubr.msk.bf16.vlgmr.msra.gmra.mxu1 %vm289_vm9, %v2158_v49 }
 0x2c4   :  { %1758 = vmatprep.mubr.msk.bf16.mxu1 %vm2081_vm0, %v2080_v2  ;;  %1757 = vmatpush3.bf16.msra.mxu1 %v1911_v22 }
 0x2c5   :  { %1768 = vmatprep.subr.bf16.mxu1 %v2080_v2 }
 0x383   :  { %v330_v52 = vpop.f32.mrf.mxu1 }
 0x384   :  { %v337_v53 = vmul.f32 0.25, %v330_v52 }
 0x385   :  { %v1748_v54 = vpop.f32.mrf.mxu1 }
 0x386   :  { %v339_v55 = vadd.f32 %v337_v53, %v2127_v3 }
 0x387   :  { %v333_v56 = vpop.f32.mrf.mxu1 }
 0x388   :  { %v338_v57 = vmul.f32 0.25, %v333_v56  ;;  %v341_v58 = vsel %vm289_vm9, %v339_v55, -inf }
 0x389   :  { %342 = vmax.xlane.f32.xlu0 %v341_v58  ;;  %v1749_v59 = vpop.f32.mrf.mxu1 }
 0x38a   :  { %v340_v60 = vadd.f32 %v338_v57, %v2129_v4 }
 0x38c   :  { %v344_v61 = vsel %vm289_vm9, %v340_v60, -inf }
 0x38d   :  { %345 = vmax.xlane.f32.xlu1 %v344_v61 }
 0x39e   :  { %364 = vrot.lane.b32.xlu1 %v2158_v49, %s2072_s15 }
 0x3a2   :  { %468 = vrot.lane.b32.xlu1 %v2158_v49, %s2084_s2 }
 0x412   :  { %v343_v62 = vpop.xlane.xlu0 %342 }
 0x413   :  { %v347_v63 = vsub.f32 %v339_v55, %v343_v62 }
 0x415   :  { %v349_v0 = vmul.f32 1.442695, %v347_v63 }
 0x416   :  { %v346_v1 = vpop.xlane.xlu1 %345 }
 0x417   :  { %1937 = vpow2.f32 %v349_v0  ;;  %v348_v5 = vsub.f32 %v340_v60, %v346_v1 }
 0x419   :  { %v351_v6 = vmul.f32 1.442695, %v348_v5 }
 0x41a   :  { %v365_v7 = vpop.permute.xlu1 %364 }
 0x41b   :  { %1939 = vpow2.f32 %v351_v6  ;;  %1751 = vmatpush3.bf16.msra.mxu0 %v365_v7  ;;  %v1613_v7 = vld [vmem:[#allocation7 + $0x3] ss:$0 sm:$0xff] }
 0x41c   :  { %1762 = vmatprep.subr.bf16.mxu0 %v2080_v2 }
 0x41e   :  { %v469_v21 = vpop.permute.xlu1 %468 }
 0x424   :  { %v1938_v8 = vpop.eup %1937 }
 0x425   :  { %v353_v9 = vsel %vm289_vm9, %v1938_v8, 0.0 }
 0x426   :  { %354 = vadd.xlane.f32.xlu0 %v353_v9 }
 0x428   :  { %v1940_v10 = vpop.eup %1939 }
 0x429   :  { %v356_v11 = vsel %vm289_vm9, %v1940_v10, 0.0 }
 0x42a   :  { %357 = vadd.xlane.f32.xlu0 %v356_v11 }
 0x440   :  { %470 = vrot.lane.b32.xlu0 %v2158_v49, %s2085_s30 }
 0x4af   :  { %v355_v12 = vpop.xlane.xlu0 %354 }
 0x4b0   :  { %1941 = vrcp.f32 %v355_v12 }
 0x4b3   :  { %v358_v13 = vpop.xlane.xlu0 %357 }
 0x4b4   :  { %1943 = vrcp.f32 %v358_v13 }
 0x4b7   :  { %v471_v18 = vpop.permute.xlu0 %470 }
 0x4b8   :  { %v476_v20 = vsel %vm289_vm9, %v471_v18, 0 }
 0x4bd   :  { %v1942_v14 = vpop.eup %1941 }
 0x4be   :  { %v361_v16 = vmul.f32 %v1942_v14, %v1938_v8 }
 0x4c1   :  { %v1944_v15 = vpop.eup %1943 }
 0x4c2   :  { %v362_v17 = vmul.f32 %v1944_v15, %v1940_v10 }
 0x4c4   :  { %v363_v19 = vpack.c.bf16 %v362_v17, %v361_v16 }
 0x4c6   :  { %1753 = vmatmul.mubr.msk.bf16.vlgmr.msra.gmra.mxu0 %vm289_vm9, %v363_v19 }
 0x4c7   :  { %1763 = vmatpush3.bf16.xpose.msra.mxu0 %v476_v20  ;;  %1764 = vmatprep.mubr.msk.bf16.mxu0 %vm2081_vm0, %v2080_v2 }
 0x4c8   :  { %1774 = vmatprep.subr.bf16.mxu0 %v2080_v2 }
 0x4ce   :  { %1765 = vmatmul.mubr.msk.bf16.vlgmr.msra.gmra.mxu0 %vm289_vm9, %v469_v21 }
 0x4cf   :  { %1776 = vmatprep.mubr.msk.bf16.mxu0 %vm2081_vm0, %v2080_v2 }
 0x586   :  { %v404_v23 = vpop.f32.mrf.mxu0 }
 0x588   :  { %v1754_v24 = vpop.f32.mrf.mxu0 }
 0x58a   :  { %v407_v25 = vpop.f32.mrf.mxu0 }
 0x58b   :  { %v411_v26 = vpack.c.bf16 %v407_v25, %v404_v23 }
 0x58c   :  { %v1755_v27 = vpop.f32.mrf.mxu0 }
 0x58d   :  { %1759 = vmatmul.mubr.msk.bf16.vlgmr.msra.gmra.mxu1 %vm289_vm9, %v411_v26 }
 0x58e   :  { %v512_v28 = vpop.f32.mrf.mxu0  ;;  %1770 = vmatprep.mubr.msk.bf16.mxu1 %vm2081_vm0, %v2080_v2 }
 0x58f   :  { %v519_v29 = vmul.f32 0.25, %v512_v28 }
 0x590   :  { %v1766_v30 = vpop.f32.mrf.mxu0 }
 0x591   :  { %v521_v31 = vadd.f32 %v519_v29, %v2127_v3  ;;  %v1913_v29 = vld [vmem:[#allocation5 + $0x48] sm:$0xff]  }
 0x592   :  { %v515_v32 = vpop.f32.mrf.mxu0  ;;  %v1915_v30 = vld [vmem:[#allocation5 + $0x88] sm:$0xff]  }
 0x593   :  { %v520_v33 = vmul.f32 0.25, %v515_v32  ;;  %v523_v34 = vsel %vm289_vm9, %v521_v31, -inf  ;;  %v1917_v32 = vld [vmem:[#allocation5 + $0x78] sm:$0xff]  }
 0x594   :  { %524 = vmax.xlane.f32.xlu1 %v523_v34  ;;  %v1767_v35 = vpop.f32.mrf.mxu0  ;;  %v1919_v34 = vld [vmem:[#allocation5 + $0x68] sm:$0xff]  }
 0x595   :  { %v522_v36 = vadd.f32 %v520_v33, %v2129_v4  ;;  %v1918_v33 = vld [vmem:[#allocation5 + $0x70] sm:$0xff]  }
 0x597   :  { %v526_v37 = vsel %vm289_vm9, %v522_v36, -inf }
 0x598   :  { %527 = vmax.xlane.f32.xlu0 %v526_v37 }
 0x61d   :  { %v525_v38 = vpop.xlane.xlu1 %524 }
 0x61e   :  { %v529_v41 = vsub.f32 %v521_v31, %v525_v38  ;;  %v1916_v31 = vld [vmem:[#allocation5 + $0x80] sm:$0xff]  }
 0x620   :  { %v531_v42 = vmul.f32 1.442695, %v529_v41 }
 0x621   :  { %v528_v43 = vpop.xlane.xlu0 %527 }
 0x622   :  { %1945 = vpow2.f32 %v531_v42  ;;  %v530_v44 = vsub.f32 %v522_v36, %v528_v43 }
 0x624   :  { %v533_v45 = vmul.f32 1.442695, %v530_v44 }
 0x626   :  { %1947 = vpow2.f32 %v533_v45  ;;  %v1618_v45 = vld [vmem:[#allocation7 + $0x4] ss:$0 sm:$0xff] }
 0x62f   :  { %v1946_v46 = vpop.eup %1945 }
 0x630   :  { %v535_v47 = vsel %vm289_vm9, %v1946_v46, 0.0 }
 0x631   :  { %536 = vadd.xlane.f32.xlu0 %v535_v47 }
 0x633   :  { %v1948_v48 = vpop.eup %1947 }
 0x634   :  { %v538_v50 = vsel %vm289_vm9, %v1948_v48, 0.0 }
 0x635   :  { %539 = vadd.xlane.f32.xlu1 %v538_v50  ;;  %v1619_v50 = vld [vmem:[#allocation7 + $0x5] ss:$0 sm:$0xff] }
 0x647   :  { %546 = vrot.lane.b32.xlu0 %v2158_v49, %s2086_s4  ;;  %v1912_v49 = vld [vmem:[#allocation5 + $0x38] sm:$0xff]  }
 0x648   :  { %1775 = vmatpush3.bf16.msra.mxu0 %v1912_v49 }
 0x649   :  { %1788 = vmatprep.subr.bf16.mxu0 %v2080_v2 }
 0x64d   :  { %v455_v51 = vpop.f32.mrf.mxu1 }
 0x64e   :  { %v466_v8 = vadd.f32 %v1613_v7, %v455_v51 }
 0x64f   :  { %v1760_v52 = vpop.f32.mrf.mxu1 }
 0x651   :  { %v458_v53 = vpop.f32.mrf.mxu1 }
 0x652   :  { %v467_v12 = vadd.f32 %v1613_v7, %v458_v53 }
 0x653   :  { %v1761_v54 = vpop.f32.mrf.mxu1 }
 0x6ba   :  { %v537_v55 = vpop.xlane.xlu0 %536 }
 0x6bb   :  { %1949 = vrcp.f32 %v537_v55  ;;  %v1920_v55 = vld [vmem:[#allocation5 + $0x60] sm:$0xff]  }
 0x6be   :  { %v540_v56 = vpop.xlane.xlu1 %539  ;;  %v547_v57 = vpop.permute.xlu0 %546 }
 0x6bf   :  { %1951 = vrcp.f32 %v540_v56  ;;  %1769 = vmatpush3.bf16.msra.mxu1 %v547_v57  ;;  %v1921_v56 = vld [vmem:[#allocation5 + $0x58] sm:$0xff]   ;;  %v1922_v57 = vld [vmem:[#allocation5 + $0x50] sm:$0xff]  }
 0x6c0   :  { %1780 = vmatprep.subr.bf16.mxu1 %v2080_v2 }
 0x6c8   :  { %v1950_v58 = vpop.eup %1949 }
 0x6c9   :  { %v543_v60 = vmul.f32 %v1950_v58, %v1946_v46  ;;  %v1620_v58 = vld [vmem:[#allocation7 + $0x6] ss:$0 sm:$0xff] }
 0x6cc   :  { %v1952_v59 = vpop.eup %1951 }
 0x6cd   :  { %v544_v61 = vmul.f32 %v1952_v59, %v1948_v48 }
 0x6cf   :  { %v545_v62 = vpack.c.bf16 %v544_v61, %v543_v60 }
 0x6d1   :  { %1771 = vmatmul.mubr.msk.bf16.vlgmr.msra.gmra.mxu1 %vm289_vm9, %v545_v62 }
 0x6d2   :  { %1784 = vmatprep.mubr.msk.bf16.mxu1 %vm2081_vm0, %v2080_v2  ;;  %1781 = vmatpush3.bf16.msra.mxu1 %v1913_v29 }
 0x6d3   :  { %1782 = vmatprep.subr.bf16.mxu1 %v2080_v2 }
 0x791   :  { %v586_v63 = vpop.f32.mrf.mxu1 }
 0x793   :  { %v1772_v0 = vpop.f32.mrf.mxu1 }
 0x795   :  { %v589_v1 = vpop.f32.mrf.mxu1 }
 0x796   :  { %v593_v5 = vpack.c.bf16 %v589_v1, %v586_v63 }
 0x797   :  { %v1773_v6 = vpop.f32.mrf.mxu1 }
 0x798   :  { %1777 = vmatmul.mubr.msk.bf16.vlgmr.msra.gmra.mxu0 %vm289_vm9, %v593_v5  ;;  %v1624_v6 = vld [vmem:[#allocation7 + $0x7] ss:$0 sm:$0xff] }
 0x799   :  { %1804 = vmatprep.mubr.msk.bf16.mxu0 %vm2081_vm0, %v2080_v2  ;;  %1789 = vmatpush3.bf16.msra.mxu0 %v1915_v30 }
 0x79a   :  { %1790 = vmatprep.subr.bf16.mxu0 %v2080_v2 }
 0x79d   :  { %1791 = vmatpush3.bf16.msra.mxu0 %v1916_v31 }
 0x79e   :  { %1792 = vmatprep.subr.bf16.mxu0 %v2080_v2 }
 0x7a1   :  { %1793 = vmatpush3.bf16.msra.mxu0 %v1917_v32 }
 0x7a2   :  { %1794 = vmatprep.subr.bf16.mxu0 %v2080_v2 }
 0x7a5   :  { %1795 = vmatpush3.bf16.msra.mxu0 %v1918_v33 }
 0x7a6   :  { %1796 = vmatprep.subr.bf16.mxu0 %v2080_v2 }
 0x7a9   :  { %1797 = vmatpush3.bf16.msra.mxu0 %v1919_v34 }
 0x7aa   :  { %1798 = vmatprep.subr.bf16.mxu0 %v2080_v2 }
 0x7ad   :  { %1799 = vmatpush3.bf16.msra.mxu0 %v1920_v55 }
 0x7ae   :  { %1800 = vmatprep.subr.bf16.mxu0 %v2080_v2 }
 0x7b1   :  { %1801 = vmatpush3.bf16.msra.mxu0 %v1921_v56 }
 0x7b2   :  { %1802 = vmatprep.subr.bf16.mxu0 %v2080_v2 }
 0x7b5   :  { %1803 = vmatpush3.bf16.msra.mxu0 %v1922_v57 }
 0x7b6   :  { %1834 = vmatprep.subr.bf16.mxu0 %v2080_v2 }
 0x858   :  { %v637_v9 = vpop.f32.mrf.mxu0 }
 0x859   :  { %v644_v10 = vadd.f32 %v637_v9, %v466_v8 }
 0x85a   :  { %v1778_v11 = vpop.f32.mrf.mxu0 }
 0x85b   :  { %v646_v13 = vadd.f32 %v644_v10, %v2149_v39 }
 0x85c   :  { %v640_v14 = vpop.f32.mrf.mxu0 }
 0x85d   :  { %v645_v15 = vadd.f32 %v640_v14, %v467_v12  ;;  %v648_v16 = vsel %vm240_vm8, %v646_v13, 0.0 }
 0x85e   :  { %649 = vadd.xlane.f32.xlu1 %v648_v16  ;;  %v1779_v17 = vpop.f32.mrf.mxu0 }
 0x85f   :  { %v647_v18 = vadd.f32 %v645_v15, %v2151_v40  ;;  %v1914_v40 = vld [vmem:[#allocation5 + $0x40] sm:$0xff]  }
 0x860   :  { %1783 = vmatpush3.bf16.msra.mxu1 %v1914_v40 }
 0x861   :  { %v651_v19 = vsel %vm240_vm8, %v647_v18, 0.0  ;;  %1808 = vmatprep.subr.bf16.mxu1 %v2080_v2 }
 0x862   :  { %652 = vadd.xlane.f32.xlu1 %v651_v19 }
 0x8e7   :  { %v650_v20 = vpop.xlane.xlu1 %649 }
 0x8e8   :  { %v655_v21 = vmul.f32 0.03125, %v650_v20 }
 0x8ea   :  { %v657_v22 = vsub.f32 %v646_v13, %v655_v21 }
 0x8eb   :  { %v653_v23 = vpop.xlane.xlu1 %652 }
 0x8ec   :  { %v656_v24 = vmul.f32 0.03125, %v653_v23  ;;  %v659_v25 = vmul.f32 %v657_v22, %v657_v22 }
 0x8ee   :  { %v658_v26 = vsub.f32 %v647_v18, %v656_v24  ;;  %v661_v39 = vsel %vm240_vm8, %v659_v25, 0.0 }
 0x8ef   :  { %662 = vadd.xlane.f32.xlu1 %v661_v39  ;;  %v1923_v39 = vld [vmem:[#allocation5 + $0x98] sm:$0xff]  }
 0x8f0   :  { %v660_v27 = vmul.f32 %v658_v26, %v658_v26 }
 0x8f2   :  { %v664_v28 = vsel %vm240_vm8, %v660_v27, 0.0  ;;  %v1924_v27 = vld [vmem:[#allocation5 + $0x90] sm:$0xff]  }
 0x8f3   :  { %665 = vadd.xlane.f32.xlu1 %v664_v28 }
 0x978   :  { %v663_v35 = vpop.xlane.xlu1 %662 }
 0x979   :  { %v667_v36 = vmul.f32 0.03125, %v663_v35  ;;  %v1633_v35 = vld [vmem:[#allocation7 + $0x8] ss:$0 sm:$0xff] }
 0x97b   :  { %v669_v37 = vadd.f32 1e-05, %v667_v36 }
 0x97c   :  { %v666_v38 = vpop.xlane.xlu1 %665 }
 0x97d   :  { %1953 = vrsqrt.f32 %v669_v37  ;;  %v668_v41 = vmul.f32 0.03125, %v666_v38 }
 0x97f   :  { %v670_v42 = vadd.f32 1e-05, %v668_v41  ;;  %v1634_v41 = vld [vmem:[#allocation7 + $0x9] ss:$0 sm:$0xff] }
 0x981   :  { %1955 = vrsqrt.f32 %v670_v42 }
 0x98a   :  { %v1954_v43 = vpop.eup %1953 }
 0x98b   :  { %v673_v44 = vmul.f32 %v1954_v43, %v657_v22 }
 0x98d   :  { %v679_v48 = vmul.f32 %v1618_v45, %v673_v44 }
 0x98e   :  { %v1956_v46 = vpop.eup %1955 }
 0x98f   :  { %v674_v47 = vmul.f32 %v1956_v46, %v658_v26  ;;  %v685_v52 = vadd.f32 %v1619_v50, %v679_v48 }
 0x991   :  { %v680_v51 = vmul.f32 %v1618_v45, %v674_v47  ;;  %v1635_v47 = vld [vmem:[#allocation7 + $0xa] ss:$0 sm:$0xff] }
 0x993   :  { %v686_v53 = vadd.f32 %v1619_v50, %v680_v51 }
 0x995   :  { %v687_v54 = vpack.c.bf16 %v686_v53, %v685_v52 }
 0x997   :  { %1785 = vmatmul.mubr.msk.bf16.vlgmr.msra.gmra.mxu1 %vm240_vm8, %v687_v54 }
 0x998   :  { %1812 = vmatprep.mubr.msk.bf16.mxu1 %vm2081_vm0, %v2080_v2  ;;  %1809 = vmatpush3.bf16.msra.mxu1 %v1923_v39 }
 0x999   :  { %1810 = vmatprep.subr.bf16.mxu1 %v2080_v2 }
 0x99c   :  { %1811 = vmatpush3.bf16.msra.mxu1 %v1924_v27 }
 0x99d   :  { %1816 = vmatprep.subr.bf16.mxu1 %v2080_v2 }
 0xa57   :  { %v741_v59 = vpop.f32.mrf.mxu1 }
 0xa58   :  { %v742_v61 = vadd.f32 %v1620_v58, %v741_v59 }
 0xa59   :  { %v1786_v60 = vpop.f32.mrf.mxu1 }
 0xa5a   :  { %v748_v0 = vmax.f32 %v742_v61, 0.0 }
 0xa5b   :  { %v744_v62 = vpop.f32.mrf.mxu1 }
 0xa5c   :  { %v745_v49 = vadd.f32 %v1620_v58, %v744_v62 }
 0xa5d   :  { %v1787_v63 = vpop.f32.mrf.mxu1 }
 0xa5e   :  { %v749_v1 = vmax.f32 %v745_v49, 0.0 }
 0xa60   :  { %v750_v5 = vpack.c.bf16 %v749_v1, %v748_v0 }
 0xa62   :  { %1805 = vmatmul.mubr.bf16.vlgmr.msra.gmra.mxu0 %v750_v5 }
 0xa63   :  { %1836 = vmatprep.mubr.msk.bf16.mxu0 %vm2081_vm0, %v2080_v2 }
 0xb22   :  { %v837_v7 = vpop.f32.mrf.mxu0 }
 0xb23   :  { %v838_v8 = vadd.f32 %v1624_v6, %v837_v7 }
 0xb24   :  { %v1806_v9 = vpop.f32.mrf.mxu0 }
 0xb25   :  { %v844_v10 = vadd.f32 %v838_v8, %v685_v52 }
 0xb26   :  { %v840_v11 = vpop.f32.mrf.mxu0 }
 0xb27   :  { %v841_v12 = vadd.f32 %v1624_v6, %v840_v11  ;;  %v846_v13 = vsel %vm240_vm8, %v844_v10, 0.0 }
 0xb28   :  { %847 = vadd.xlane.f32.xlu1 %v846_v13  ;;  %v1807_v14 = vpop.f32.mrf.mxu0 }
 0xb29   :  { %v845_v15 = vadd.f32 %v841_v12, %v686_v53 }
 0xb2b   :  { %v849_v16 = vsel %vm240_vm8, %v845_v15, 0.0 }
 0xb2c   :  { %850 = vadd.xlane.f32.xlu1 %v849_v16 }
 0xbb1   :  { %v848_v17 = vpop.xlane.xlu1 %847 }
 0xbb2   :  { %v852_v18 = vmul.f32 0.03125, %v848_v17 }
 0xbb4   :  { %v854_v19 = vsub.f32 %v844_v10, %v852_v18 }
 0xbb5   :  { %v851_v20 = vpop.xlane.xlu1 %850 }
 0xbb6   :  { %v853_v21 = vmul.f32 0.03125, %v851_v20  ;;  %v856_v22 = vmul.f32 %v854_v19, %v854_v19 }
 0xbb8   :  { %v855_v23 = vsub.f32 %v845_v15, %v853_v21  ;;  %v858_v24 = vsel %vm240_vm8, %v856_v22, 0.0 }
 0xbb9   :  { %859 = vadd.xlane.f32.xlu0 %v858_v24 }
 0xbba   :  { %v857_v25 = vmul.f32 %v855_v23, %v855_v23 }
 0xbbc   :  { %v861_v26 = vsel %vm240_vm8, %v857_v25, 0.0 }
 0xbbd   :  { %862 = vadd.xlane.f32.xlu1 %v861_v26 }
 0xc42   :  { %v860_v28 = vpop.xlane.xlu0 %859 }
 0xc43   :  { %v864_v29 = vmul.f32 0.03125, %v860_v28 }
 0xc45   :  { %v866_v40 = vadd.f32 1e-05, %v864_v29 }
 0xc46   :  { %v863_v30 = vpop.xlane.xlu1 %862 }
 0xc47   :  { %1957 = vrsqrt.f32 %v866_v40  ;;  %v865_v31 = vmul.f32 0.03125, %v863_v30 }
 0xc49   :  { %v867_v32 = vadd.f32 1e-05, %v865_v31 }
 0xc4b   :  { %1959 = vrsqrt.f32 %v867_v32 }
 0xc54   :  { %v1958_v33 = vpop.eup %1957 }
 0xc55   :  { %v870_v34 = vmul.f32 %v1958_v33, %v854_v19 }
 0xc57   :  { %v876_v38 = vmul.f32 %v1633_v35, %v870_v34 }
 0xc58   :  { %v1960_v36 = vpop.eup %1959 }
 0xc59   :  { %v871_v37 = vmul.f32 %v1960_v36, %v855_v23  ;;  %v2236_v43 = vadd.f32 %v1634_v41, %v876_v38 }
 0xc5b   :  { %v877_v42 = vmul.f32 %v1633_v35, %v871_v37 }
 0xc5d   :  { %v2238_v44 = vadd.f32 %v1634_v41, %v877_v42 }
 0xc5f   :  { %v920_v45 = vpack.c.bf16 %v2238_v44, %v2236_v43 }
 0xc61   :  { %1813 = vmatmul.mubr.msk.bf16.vlgmr.msra.gmra.mxu1 %vm240_vm8, %v920_v45 }
 0xc62   :  { %1818 = vmatprep.mubr.msk.bf16.mxu1 %vm2081_vm0, %v2080_v2 }
 0xd21   :  { %v974_v46 = vpop.f32.mrf.mxu1 }
 0xd22   :  { %v975_v51 = vadd.f32 %v1635_v47, %v974_v46  ;;  %v1925_v46 = vld [vmem:[#allocation5 + $0xa0] sm:$0xff]  }
 0xd23   :  { %v1814_v48 = vpop.f32.mrf.mxu1 }
 0xd25   :  { %v977_v50 = vpop.f32.mrf.mxu1 }
 0xd26   :  { %v978_v52 = vadd.f32 %v1635_v47, %v977_v50 }
 0xd27   :  { %v1815_v53 = vpop.f32.mrf.mxu1 }
 0xd28   :  { %v2245_v54 = vpack.c.bf16 %v978_v52, %v975_v51 }
 0xd2a   :  { %983 = vrot.lane.b32.xlu1 %v2245_v54, %s2083_s0 }
 0xd2e   :  { %1165 = vrot.lane.b32.xlu1 %v2245_v54, %s2085_s30 }
 0xd32   :  { %1163 = vrot.lane.b32.xlu1 %v2245_v54, %s2084_s2 }
 0xd9c   :  { %v984_v55 = vpop.permute.xlu1 %983 }
 0xd9d   :  { %v989_v56 = vsel %vm289_vm9, %v984_v55, 0 }
 0xd9e   :  { %1817 = vmatpush3.bf16.xpose.msra.mxu1 %v989_v56 }
 0xd9f   :  { %1822 = vmatprep.subr.bf16.mxu1 %v2080_v2 }
 0xda0   :  { %v1166_v57 = vpop.permute.xlu1 %1165 }
 0xda1   :  { %v1171_v58 = vsel %vm289_vm9, %v1166_v57, 0 }
 0xda2   :  { %1835 = vmatpush3.bf16.xpose.msra.mxu0 %v1171_v58 }
 0xda3   :  { %1846 = vmatprep.subr.bf16.mxu0 %v2080_v2 }
 0xda4   :  { %v1164_v59 = vpop.permute.xlu1 %1163 }
 0xda5   :  { %1819 = vmatmul.mubr.msk.bf16.vlgmr.msra.gmra.mxu1 %vm289_vm9, %v2245_v54 }
 0xda6   :  { %1824 = vmatprep.mubr.msk.bf16.mxu1 %vm2081_vm0, %v2080_v2 }
 0xda9   :  { %1837 = vmatmul.mubr.msk.bf16.vlgmr.msra.gmra.mxu0 %vm289_vm9, %v1164_v59 }
 0xdaa   :  { %1848 = vmatprep.mubr.msk.bf16.mxu0 %vm2081_vm0, %v2080_v2 }
 0xe65   :  { %v1025_v60 = vpop.f32.mrf.mxu1 }
 0xe66   :  { %v1032_v61 = vmul.f32 0.25, %v1025_v60 }
 0xe67   :  { %v1820_v62 = vpop.f32.mrf.mxu1 }
 0xe68   :  { %v1034_v49 = vadd.f32 %v1032_v61, %v2127_v3  ;;  %v1926_v61 = vld [vmem:[#allocation5 + $0xa8] sm:$0xff]  }
 0xe69   :  { %v1028_v63 = vpop.f32.mrf.mxu1  ;;  %v1207_v0 = vpop.f32.mrf.mxu0  ;;  %1847 = vmatpush3.bf16.msra.mxu0 %v1926_v61 }
 0xe6a   :  { %v1033_v1 = vmul.f32 0.25, %v1028_v63  ;;  %v1036_v5 = vsel %vm289_vm9, %v1034_v49, -inf  ;;  %1860 = vmatprep.subr.bf16.mxu0 %v2080_v2 }
 0xe6b   :  { %v1838_v6 = vpop.f32.mrf.mxu0  ;;  %1037 = vmax.xlane.f32.xlu0 %v1036_v5  ;;  %v1821_v7 = vpop.f32.mrf.mxu1 }
 0xe6c   :  { %v1035_v8 = vadd.f32 %v1033_v1, %v2129_v4 }
 0xe6d   :  { %v1210_v9 = vpop.f32.mrf.mxu0 }
 0xe6e   :  { %v1215_v10 = vmul.f32 0.25, %v1210_v9  ;;  %v1039_v11 = vsel %vm289_vm9, %v1035_v8, -inf  ;;  %v1643_v9 = vld [vmem:[#allocation7 + $0xb] ss:$0 sm:$0xff] }
 0xe6f   :  { %v1839_v12 = vpop.f32.mrf.mxu0  ;;  %1040 = vmax.xlane.f32.xlu1 %v1039_v11 }
 0xe70   :  { %v1217_v13 = vadd.f32 %v1215_v10, %v2129_v4  ;;  %v1214_v4 = vmul.f32 0.25, %v1207_v0 }
 0xe72   :  { %v1221_v14 = vsel %vm289_vm9, %v1217_v13, -inf  ;;  %v1216_v25 = vadd.f32 %v1214_v4, %v2127_v3 }
 0xe73   :  { %1222 = vmax.xlane.f32.xlu1 %v1221_v14 }
 0xe74   :  { %v1218_v26 = vsel %vm289_vm9, %v1216_v25, -inf }
 0xef4   :  { %v1038_v15 = vpop.xlane.xlu0 %1037 }
 0xef5   :  { %v1042_v16 = vsub.f32 %v1034_v49, %v1038_v15 }
 0xef7   :  { %v1044_v17 = vmul.f32 1.442695, %v1042_v16 }
 0xef8   :  { %v1041_v18 = vpop.xlane.xlu1 %1040 }
 0xef9   :  { %1961 = vpow2.f32 %v1044_v17  ;;  %v1043_v19 = vsub.f32 %v1035_v8, %v1041_v18 }
 0xefb   :  { %v1046_v20 = vmul.f32 1.442695, %v1043_v19 }
 0xefc   :  { %v1223_v3 = vpop.xlane.xlu1 %1222 }
 0xefd   :  { %1963 = vpow2.f32 %v1046_v20  ;;  %v1225_v33 = vsub.f32 %v1217_v13, %v1223_v3  ;;  %v1933_v3 = vld [vmem:[#allocation5 + $0xd8] sm:$0xff]  }
 0xeff   :  { %v1228_v36 = vmul.f32 1.442695, %v1225_v33 }
 0xf06   :  { %v1962_v21 = vpop.eup %1961 }
 0xf07   :  { %v1048_v22 = vsel %vm289_vm9, %v1962_v21, 0.0 }
 0xf08   :  { %1049 = vadd.xlane.f32.xlu0 %v1048_v22 }
 0xf0a   :  { %v1964_v23 = vpop.eup %1963 }
 0xf0b   :  { %v1051_v24 = vsel %vm289_vm9, %v1964_v23, 0.0 }
 0xf0c   :  { %1052 = vadd.xlane.f32.xlu0 %v1051_v24 }
 0xf22   :  { %1059 = vrot.lane.b32.xlu0 %v2245_v54, %s2072_s15 }
 0xf41   :  { %1219 = vmax.xlane.f32.xlu0 %v1218_v26 }
 0xf91   :  { %v1050_v39 = vpop.xlane.xlu0 %1049 }
 0xf92   :  { %1965 = vrcp.f32 %v1050_v39 }
 0xf95   :  { %v1053_v27 = vpop.xlane.xlu0 %1052 }
 0xf96   :  { %1967 = vrcp.f32 %v1053_v27 }
 0xf99   :  { %v1060_v28 = vpop.permute.xlu0 %1059 }
 0xf9a   :  { %1823 = vmatpush3.bf16.msra.mxu1 %v1060_v28 }
 0xf9b   :  { %1828 = vmatprep.subr.bf16.mxu1 %v2080_v2 }
 0xf9f   :  { %v1966_v29 = vpop.eup %1965 }
 0xfa0   :  { %v1056_v30 = vmul.f32 %v1966_v29, %v1962_v21  ;;  %v1927_v29 = vld [vmem:[#allocation5 + $0xb8] sm:$0xff]  }
 0xfa3   :  { %v1968_v40 = vpop.eup %1967 }
 0xfa4   :  { %v1057_v31 = vmul.f32 %v1968_v40, %v1964_v23  ;;  %v1929_v40 = vld [vmem:[#allocation5 + $0xf8] sm:$0xff]  }
 0xfa6   :  { %v1058_v32 = vpack.c.bf16 %v1057_v31, %v1056_v30  ;;  %v1930_v30 = vld [vmem:[#allocation5 + $0xf0] sm:$0xff]   ;;  %v1931_v31 = vld [vmem:[#allocation5 + $0xe8] sm:$0xff]  }
 0xfa8   :  { %1825 = vmatmul.mubr.msk.bf16.vlgmr.msra.gmra.mxu1 %vm289_vm9, %v1058_v32  ;;  %v1932_v32 = vld [vmem:[#allocation5 + $0xe0] sm:$0xff]  }
 0xfa9   :  { %1830 = vmatprep.mubr.msk.bf16.mxu1 %vm2081_vm0, %v2080_v2  ;;  %1829 = vmatpush3.bf16.msra.mxu1 %v1925_v46 }
 0xfaa   :  { %1840 = vmatprep.subr.bf16.mxu1 %v2080_v2 }
 0xfca   :  { %v1220_v34 = vpop.xlane.xlu0 %1219 }
 0xfcb   :  { %v1224_v35 = vsub.f32 %v1216_v25, %v1220_v34 }
 0xfcd   :  { %v1226_v37 = vmul.f32 1.442695, %v1224_v35 }
 0xfcf   :  { %1969 = vpow2.f32 %v1226_v37 }
 0xfd0   :  { %1971 = vpow2.f32 %v1228_v36 }
 0xfdc   :  { %v1970_v38 = vpop.eup %1969 }
 0xfdd   :  { %v1230_v41 = vsel %vm289_vm9, %v1970_v38, 0.0  ;;  %v1972_v42 = vpop.eup %1971 }
 0xfde   :  { %1231 = vadd.xlane.f32.xlu1 %v1230_v41  ;;  %v1233_v45 = vsel %vm289_vm9, %v1972_v42, 0.0 }
 0xfe2   :  { %1234 = vadd.xlane.f32.xlu1 %v1233_v45  ;;  %v1648_v45 = vld [vmem:[#allocation7 + $0xc] ss:$0 sm:$0xff] }
 0xff3   :  { %1241 = vrot.lane.b32.xlu1 %v2245_v54, %s2086_s4 }
0x1067   :  { %v1232_v47 = vpop.xlane.xlu1 %1231 }
0x1068   :  { %v1099_v48 = vpop.f32.mrf.mxu1  ;;  %1973 = vrcp.f32 %v1232_v47 }
0x106a   :  { %v1826_v50 = vpop.f32.mrf.mxu1 }
0x106b   :  { %v1235_v51 = vpop.xlane.xlu1 %1234  ;;  %v1649_v50 = vld [vmem:[#allocation7 + $0xd] ss:$0 sm:$0xff] }
0x106c   :  { %1975 = vrcp.f32 %v1235_v51  ;;  %v1102_v52 = vpop.f32.mrf.mxu1 }
0x106d   :  { %v1106_v53 = vpack.c.bf16 %v1102_v52, %v1099_v48 }
0x106e   :  { %v1827_v55 = vpop.f32.mrf.mxu1 }
0x106f   :  { %v1242_v56 = vpop.permute.xlu1 %1241  ;;  %1831 = vmatmul.mubr.msk.bf16.vlgmr.msra.gmra.mxu1 %vm289_vm9, %v1106_v53 }
0x1070   :  { %1841 = vmatpush3.bf16.msra.mxu1 %v1242_v56  ;;  %1842 = vmatprep.mubr.msk.bf16.mxu1 %vm2081_vm0, %v2080_v2  ;;  %v1934_v56 = vld [vmem:[#allocation5 + $0xd0] sm:$0xff]  }
0x1071   :  { %1852 = vmatprep.subr.bf16.mxu1 %v2080_v2 }
0x1075   :  { %v1974_v57 = vpop.eup %1973 }
0x1076   :  { %v1238_v58 = vmul.f32 %v1974_v57, %v1970_v38  ;;  %v1935_v57 = vld [vmem:[#allocation5 + $0xc8] sm:$0xff]  }
0x1079   :  { %v1976_v54 = vpop.eup %1975 }
0x107a   :  { %v1239_v59 = vmul.f32 %v1976_v54, %v1972_v42  ;;  %v1936_v54 = vld [vmem:[#allocation5 + $0xc0] sm:$0xff]  }
0x107c   :  { %v1240_v60 = vpack.c.bf16 %v1239_v59, %v1238_v58  ;;  %v1650_v58 = vld [vmem:[#allocation7 + $0xe] ss:$0 sm:$0xff] }
0x107e   :  { %1843 = vmatmul.mubr.msk.bf16.vlgmr.msra.gmra.mxu1 %vm289_vm9, %v1240_v60 }
0x107f   :  { %1856 = vmatprep.mubr.msk.bf16.mxu1 %vm2081_vm0, %v2080_v2  ;;  %1853 = vmatpush3.bf16.msra.mxu1 %v1927_v29 }
0x1080   :  { %1854 = vmatprep.subr.bf16.mxu1 %v2080_v2 }
0x112f   :  { %v1150_v62 = vpop.f32.mrf.mxu1 }
0x1130   :  { %v1161_v10 = vadd.f32 %v1643_v9, %v1150_v62 }
0x1131   :  { %v1832_v49 = vpop.f32.mrf.mxu1 }
0x1133   :  { %v1153_v63 = vpop.f32.mrf.mxu1 }
0x1134   :  { %v1162_v14 = vadd.f32 %v1643_v9, %v1153_v63 }
0x1135   :  { %v1833_v0 = vpop.f32.mrf.mxu1 }
0x113e   :  { %v1281_v1 = vpop.f32.mrf.mxu1 }
0x1140   :  { %v1844_v5 = vpop.f32.mrf.mxu1 }
0x1142   :  { %v1284_v6 = vpop.f32.mrf.mxu1 }
0x1143   :  { %v1288_v7 = vpack.c.bf16 %v1284_v6, %v1281_v1  ;;  %v1654_v6 = vld [vmem:[#allocation7 + $0xf] ss:$0 sm:$0xff] }
0x1144   :  { %v1845_v8 = vpop.f32.mrf.mxu1 }
0x1145   :  { %1849 = vmatmul.mubr.msk.bf16.vlgmr.msra.gmra.mxu0 %vm289_vm9, %v1288_v7 }
0x1146   :  { %1876 = vmatprep.mubr.msk.bf16.mxu0 %vm2081_vm0, %v2080_v2  ;;  %1861 = vmatpush3.bf16.msra.mxu0 %v1929_v40 }
0x1147   :  { %1862 = vmatprep.subr.bf16.mxu0 %v2080_v2 }
0x114a   :  { %1863 = vmatpush3.bf16.msra.mxu0 %v1930_v30  ;;  %v1664_v30 = vld [vmem:[#allocation7 + $0x11] ss:$0 sm:$0xff] }
0x114b   :  { %1864 = vmatprep.subr.bf16.mxu0 %v2080_v2 }
0x114e   :  { %1865 = vmatpush3.bf16.msra.mxu0 %v1931_v31 }
0x114f   :  { %1866 = vmatprep.subr.bf16.mxu0 %v2080_v2 }
0x1152   :  { %1867 = vmatpush3.bf16.msra.mxu0 %v1932_v32 }
0x1153   :  { %1868 = vmatprep.subr.bf16.mxu0 %v2080_v2 }
0x1156   :  { %1869 = vmatpush3.bf16.msra.mxu0 %v1933_v3 }
0x1157   :  { %1870 = vmatprep.subr.bf16.mxu0 %v2080_v2 }
0x115a   :  { %1871 = vmatpush3.bf16.msra.mxu0 %v1934_v56 }
0x115b   :  { %1872 = vmatprep.subr.bf16.mxu0 %v2080_v2 }
0x115e   :  { %1873 = vmatpush3.bf16.msra.mxu0 %v1935_v57 }
0x115f   :  { %1874 = vmatprep.subr.bf16.mxu0 %v2080_v2 }
0x1162   :  { %1875 = vmatpush3.bf16.msra.mxu0 %v1936_v54 }
0x1205   :  { %v1332_v11 = vpop.f32.mrf.mxu0 }
0x1206   :  { %v1339_v12 = vadd.f32 %v1332_v11, %v1161_v10 }
0x1207   :  { %v1850_v13 = vpop.f32.mrf.mxu0 }
0x1208   :  { %v1341_v15 = vadd.f32 %v1339_v12, %v2236_v43 }
0x1209   :  { %v1335_v16 = vpop.f32.mrf.mxu0 }
0x120a   :  { %v1340_v17 = vadd.f32 %v1335_v16, %v1162_v14  ;;  %v1343_v18 = vsel %vm240_vm8, %v1341_v15, 0.0 }
0x120b   :  { %1344 = vadd.xlane.f32.xlu0 %v1343_v18  ;;  %v1851_v19 = vpop.f32.mrf.mxu0 }
0x120c   :  { %v1342_v20 = vadd.f32 %v1340_v17, %v2238_v44  ;;  %v1928_v44 = vld [vmem:[#allocation5 + $0xb0] sm:$0xff]  }
0x120d   :  { %1855 = vmatpush3.bf16.msra.mxu1 %v1928_v44  ;;  %v1663_v44 = vld [vmem:[#allocation7 + $0x10] ss:$0 sm:$0xff] }
0x120e   :  { %v1346_v21 = vsel %vm240_vm8, %v1342_v20, 0.0 }
0x120f   :  { %1347 = vadd.xlane.f32.xlu1 %v1346_v21 }
0x1294   :  { %v1345_v22 = vpop.xlane.xlu0 %1344 }
0x1295   :  { %v1349_v23 = vmul.f32 0.03125, %v1345_v22 }
0x1297   :  { %v1351_v24 = vsub.f32 %v1341_v15, %v1349_v23 }
0x1298   :  { %v1348_v4 = vpop.xlane.xlu1 %1347 }
0x1299   :  { %v1350_v25 = vmul.f32 0.03125, %v1348_v4  ;;  %v1353_v26 = vmul.f32 %v1351_v24, %v1351_v24 }
0x129b   :  { %v1352_v39 = vsub.f32 %v1342_v20, %v1350_v25  ;;  %v1355_v43 = vsel %vm240_vm8, %v1353_v26, 0.0 }
0x129c   :  { %1356 = vadd.xlane.f32.xlu0 %v1355_v43 }
0x129d   :  { %v1354_v27 = vmul.f32 %v1352_v39, %v1352_v39 }
0x129f   :  { %v1358_v28 = vsel %vm240_vm8, %v1354_v27, 0.0 }
0x12a0   :  { %1359 = vadd.xlane.f32.xlu0 %v1358_v28 }
0x1325   :  { %v1357_v33 = vpop.xlane.xlu0 %1356 }
0x1326   :  { %v1361_v34 = vmul.f32 0.03125, %v1357_v33 }
0x1328   :  { %v1363_v35 = vadd.f32 1e-05, %v1361_v34 }
0x1329   :  { %v1360_v36 = vpop.xlane.xlu0 %1359 }
0x132a   :  { %1977 = vrsqrt.f32 %v1363_v35  ;;  %v1362_v37 = vmul.f32 0.03125, %v1360_v36 }
0x132c   :  { %v1364_v38 = vadd.f32 1e-05, %v1362_v37 }
0x132e   :  { %1979 = vrsqrt.f32 %v1364_v38 }
0x1337   :  { %v1978_v41 = vpop.eup %1977 }
0x1338   :  { %v1367_v42 = vmul.f32 %v1978_v41, %v1351_v24 }
0x133a   :  { %v1373_v48 = vmul.f32 %v1648_v45, %v1367_v42 }
0x133b   :  { %v1980_v46 = vpop.eup %1979 }
0x133c   :  { %v1368_v47 = vmul.f32 %v1980_v46, %v1352_v39  ;;  %v1379_v52 = vadd.f32 %v1649_v50, %v1373_v48 }
0x133e   :  { %v1374_v51 = vmul.f32 %v1648_v45, %v1368_v47 }
0x1340   :  { %v1380_v53 = vadd.f32 %v1649_v50, %v1374_v51 }
0x1342   :  { %v1381_v55 = vpack.c.bf16 %v1380_v53, %v1379_v52 }
0x1344   :  { %1857 = vmatmul.mubr.msk.bf16.vlgmr.msra.gmra.mxu1 %vm240_vm8, %v1381_v55 }
0x1404   :  { %v1435_v59 = vpop.f32.mrf.mxu1 }
0x1405   :  { %v1436_v61 = vadd.f32 %v1650_v58, %v1435_v59 }
0x1406   :  { %v1858_v60 = vpop.f32.mrf.mxu1 }
0x1407   :  { %v1442_v0 = vmax.f32 %v1436_v61, 0.0 }
0x1408   :  { %v1438_v62 = vpop.f32.mrf.mxu1 }
0x1409   :  { %v1439_v49 = vadd.f32 %v1650_v58, %v1438_v62 }
0x140a   :  { %v1859_v63 = vpop.f32.mrf.mxu1 }
0x140b   :  { %v1443_v1 = vmax.f32 %v1439_v49, 0.0 }
0x140d   :  { %v1444_v5 = vpack.c.bf16 %v1443_v1, %v1442_v0 }
0x140f   :  { %1877 = vmatmul.mubr.bf16.vlgmr.msra.gmra.mxu0 %v1444_v5 }
0x14cf   :  { %v1531_v7 = vpop.f32.mrf.mxu0 }
0x14d0   :  { %v1532_v8 = vadd.f32 %v1654_v6, %v1531_v7 }
0x14d1   :  { %v1878_v9 = vpop.f32.mrf.mxu0 }
0x14d2   :  { %v1538_v10 = vadd.f32 %v1532_v8, %v1379_v52 }
0x14d3   :  { %v1534_v11 = vpop.f32.mrf.mxu0 }
0x14d4   :  { %v1535_v2 = vadd.f32 %v1654_v6, %v1534_v11  ;;  %v1540_v12 = vsel %vm240_vm8, %v1538_v10, 0.0 }
0x14d5   :  { %1541 = vadd.xlane.f32.xlu0 %v1540_v12  ;;  %v1879_v13 = vpop.f32.mrf.mxu0 }
0x14d6   :  { %v1539_v14 = vadd.f32 %v1535_v2, %v1380_v53 }
0x14d8   :  { %v1543_v15 = vsel %vm240_vm8, %v1539_v14, 0.0 }
0x14d9   :  { %1544 = vadd.xlane.f32.xlu0 %v1543_v15 }
0x155e   :  { %v1542_v16 = vpop.xlane.xlu0 %1541 }
0x155f   :  { %v1546_v17 = vmul.f32 0.03125, %v1542_v16 }
0x1561   :  { %v1548_v18 = vsub.f32 %v1538_v10, %v1546_v17 }
0x1562   :  { %v1545_v19 = vpop.xlane.xlu0 %1544 }
0x1563   :  { %v1547_v20 = vmul.f32 0.03125, %v1545_v19  ;;  %v1550_v21 = vmul.f32 %v1548_v18, %v1548_v18 }
0x1565   :  { %v1549_v22 = vsub.f32 %v1539_v14, %v1547_v20  ;;  %v1552_v23 = vsel %vm240_vm8, %v1550_v21, 0.0 }
0x1566   :  { %1553 = vadd.xlane.f32.xlu0 %v1552_v23 }
0x1567   :  { %v1551_v24 = vmul.f32 %v1549_v22, %v1549_v22 }
0x1569   :  { %v1555_v4 = vsel %vm240_vm8, %v1551_v24, 0.0 }
0x156a   :  { %1556 = vadd.xlane.f32.xlu0 %v1555_v4 }
0x15ef   :  { %v1554_v25 = vpop.xlane.xlu0 %1553 }
0x15f0   :  { %v1558_v26 = vmul.f32 0.03125, %v1554_v25 }
0x15f2   :  { %v1560_v39 = vadd.f32 1e-05, %v1558_v26 }
0x15f3   :  { %v1557_v43 = vpop.xlane.xlu0 %1556 }
0x15f4   :  { %1981 = vrsqrt.f32 %v1560_v39  ;;  %v1559_v27 = vmul.f32 0.03125, %v1557_v43 }
0x15f6   :  { %v1561_v28 = vadd.f32 1e-05, %v1559_v27 }
0x15f8   :  { %1983 = vrsqrt.f32 %v1561_v28 }
0x1601   :  { %v1982_v29 = vpop.eup %1981 }
0x1602   :  { %v1564_v40 = vmul.f32 %v1982_v29, %v1548_v18 }
0x1604   :  { %v1570_v31 = vmul.f32 %v1663_v44, %v1564_v40 }
0x1605   :  { %v1984_v32 = vpop.eup %1983 }
0x1606   :  { %v1565_v3 = vmul.f32 %v1984_v32, %v1549_v22  ;;  %v1576_v33 = vadd.f32 %v1664_v30, %v1570_v31 }
0x1608   :  { %v1571_v34 = vmul.f32 %v1663_v44, %v1565_v3  ;;  %1578 = vst.msk [vmem:[#allocation8] sm:$0xff] %vm240_vm8, %v1576_v33 }
0x160a   :  { %v1577_v35 = vadd.f32 %v1664_v30, %v1571_v34 }
0x160c   :  { %1579 = vst.msk [vmem:[#allocation8 + $0x8] sm:$0xff] %vm240_vm8, %v1577_v35 }
0x160d   :  { %2056 = shalt.err (!%p2053_p5)
}
0x160e   :  { %1591 = dma.vmem_to_hbm [thread:$0]  %s1586_s6, 256, %s2326_s3, [#allocation4], %s2075_s22, %s2075_s22, %s2076_s23  }
0x160f   :  { %2069 = dma.done.wait [#allocation4], 256  }
0x1610   :  { %2070 = vsyncadd [#allocation4], 4294967040 }
0x1611   :  { %1595 = vsyncpa [#allocation3], 1 }
0x1612   :  { %1596 = vsyncpa [#allocation6], 1 }
0x1613   :  { %1597 = vsyncpa [#allocation4], 1 }

</bundles_post_ra>
